<compile_context>
chip_gen: v5e
topology: v5e:2x2
jax: 0.10.0
libtpu: 0.0.40
codegen_flags: <defaults>
</compile_context>

<pallas_src>
import functools

import jax
import jax.numpy as jnp
from jax.experimental import pallas as pl
from jax.experimental.pallas import tpu as pltpu


# ----------------------------- Pallas kernel --------------------------------
def lstm_chunk_kernel(x_ref, h0_ref, c0_ref, wih_ref, whh_ref, b_ref,
                      h_out_ref, c_out_ref, gx_sc, h_sc, c_sc,
                      *, seq_len, unroll):
    """One grid step == one chunk of up-to-Tc LSTM time steps for one batch block.

    Relies on:
      * the chunk axis being the LAST (fastest-varying) grid dimension, so all
        chunks of a given batch block run contiguously and the h/c carry in
        scratch is valid across them;
      * padded gate columns staying exactly 0: zero-padded weights + zero bias
        + zero-padded h0/c0 columns => padded c/h columns remain 0 every step.
    """
    chunk = pl.program_id(1)               # serial time-chunk axis ("arbitrary")
    n_chunks = pl.num_programs(1)
    rows, _ = x_ref.shape                  # rows = Tc * B_blk
    B_blk, Hp = h_sc.shape
    Tc = rows // B_blk

    # (Re)initialize the (h, c) carry at the first chunk of each batch block.
    @pl.when(chunk == 0)
    def _():
        h_sc[...] = h0_ref[...]
        c_sc[...] = c0_ref[...]

    # Hoisted, batched input projection (+ folded bias) for the WHOLE chunk:
    # one (Tc*B_blk, E) @ (E, 4*Hp) MXU matmul instead of a tiny matmul per step.
    gx_sc[...] = (jnp.dot(x_ref[...], wih_ref[...],
                          preferred_element_type=jnp.float32)
                  + b_ref[...])

    w_dt = whh_ref.dtype
    # Number of valid time steps in this chunk (last chunk may be ragged).
    steps = jnp.minimum(Tc, seq_len - chunk * Tc)

    def sigmoid_t(x):
        # sigmoid via tanh: one EUP op instead of exp + divide on the serial path.
        return 0.5 * (jnp.tanh(0.5 * x) + 1.0)

    def step(t, carry):
        h, c = carry
        r0 = pl.multiple_of(t * B_blk, B_blk)
        gates = gx_sc[pl.ds(r0, B_blk), :] + jnp.dot(
            h.astype(w_dt), whh_ref[...], preferred_element_type=jnp.float32)
        # PyTorch gate order (i, f, g, o); each gate occupies a lane-aligned
        # Hp-wide column block (see _pack_gate_cols) -> slices are free vreg views.
        i_g = sigmoid_t(gates[:, 0 * Hp:1 * Hp])
        f_g = sigmoid_t(gates[:, 1 * Hp:2 * Hp])
        g_g = jnp.tanh(gates[:, 2 * Hp:3 * Hp])
        o_g = sigmoid_t(gates[:, 3 * Hp:4 * Hp])
        c_new = f_g * c + i_g * g_g
        h_new = o_g * jnp.tanh(c_new)
        valid = t < steps                  # predicate out the ragged tail
        return (jnp.where(valid, h_new, h), jnp.where(valid, c_new, c))

    h_fin, c_fin = jax.lax.fori_loop(0, Tc, step, (h_sc[...], c_sc[...]),
                                     unroll=unroll)
    h_sc[...] = h_fin
    c_sc[...] = c_fin

    @pl.when(chunk == n_chunks - 1)
    def _():
        h_out_ref[...] = h_fin
        c_out_ref[...] = c_fin


# ------------------------------ helpers --------------------------------------
def _ceil_to(x, m):
    return ((x + m - 1) // m) * m


def _pack_gate_cols(w_t, H, Hp):
    """(K, 4H) with PyTorch gate order [i|f|g|o] -> (K, 4*Hp); each gate lands in
    its own lane-aligned Hp-wide column block, zero padded (padding is inert:
    zero weights + zero bias keep the padded h/c columns at exactly 0)."""
    K = w_t.shape[0]
    out = jnp.zeros((K, 4 * Hp), w_t.dtype)
    for g in range(4):
        out = out.at[:, g * Hp: g * Hp + H].set(w_t[:, g * H: (g + 1) * H])
    return out


# ------------------------------ JAX wrapper ----------------------------------
@functools.partial(jax.jit, static_argnames=("matmul_dtype", "hh_dtype",
                                             "max_chunk", "batch_blocks"))
def rnn_model_forward(x_tokens, h0, c0, params, *,
                      matmul_dtype=jnp.bfloat16, hh_dtype=None,
                      max_chunk=64, batch_blocks=1):
    """
    x_tokens : (B, T) int32 token ids
    h0, c0   : (1, B, H) float32 initial hidden / cell state (layer_num=1)
    returns  : (h_n, c_n), each (1, B, H) — exactly what RNNModel.forward returns

    matmul_dtype : dtype of x / W_ih (and, by default, W_hh) for the MXU matmuls.
                   bf16 default on all generations; accumulation, carries and
                   gate math stay f32.
    hh_dtype     : override for the recurrent W_hh matmul dtype (e.g. jnp.float32
                   for very long sequences where bf16 carry-cast error compounds).
    batch_blocks : >1 splits the batch over TensorCores (CORE_PARALLEL axis,
                   v7x).  Automatically collapsed to 1 unless every shard keeps
                   >= 128 rows; single-TC chips (v5e/v6e) should leave this at 1.
    """
    if hh_dtype is None:
        hh_dtype = matmul_dtype

    emb_w = params["emb_weight"]            # (V, E)
    w_ih = params["w_ih"]                   # (4H, E)  (PyTorch layout)
    w_hh = params["w_hh"]                   # (4H, H)
    bias = params["b_ih"] + params["b_hh"]  # (4H,)

    B, T = x_tokens.shape
    E = emb_w.shape[1]
    H = w_hh.shape[1]

    if T == 0:                              # no steps -> hidden state unchanged
        return h0, c0

    # ---- batch split heuristic: never shrink B_blk below 128 rows -----------
    if batch_blocks > 1:
        batch_blocks = max(1, min(batch_blocks, B // 128))

    # ---- padded / lane-aligned sizes ----------------------------------------
    Hp = _ceil_to(H, 128)                            # lane-aligned gates + dense stores
    B_blk = _ceil_to(pl.cdiv(B, batch_blocks), 8)    # f32 sublane granule
    B_pad = B_blk * batch_blocks

    # Time chunking: no divisibility requirement (ragged tail is predicated).
    Tc = min(T, max_chunk)
    while Tc > 8 and Tc * B_blk * 4 * Hp * 4 > (16 << 20):   # cap gx_sc at ~16 MiB
        Tc = (Tc + 1) // 2
    n_chunks = pl.cdiv(T, Tc)
    T_pad = n_chunks * Tc

    # Partial-unroll guard: full unroll only while the gates tile stays small.
    gates_tile_bytes = B_blk * 4 * Hp * 4
    unroll = Tc if gates_tile_bytes <= 16 * 4096 else min(Tc, 8)
    unroll = max(1, unroll)

    # ---- reorder TOKEN IDS (tiny int32) into kernel layout, then gather -----
    ids = jnp.pad(x_tokens, ((0, B_pad - B), (0, 0)))                # (B_pad, T)
    ids = jnp.transpose(ids.reshape(batch_blocks, B_blk, T), (0, 2, 1))  # (bb,T,B_blk)
    emb = jnp.take(emb_w, ids, axis=0).astype(matmul_dtype)         # (bb,T,B_blk,E)
    emb = jnp.pad(emb, ((0, 0), (0, T_pad - T), (0, 0), (0, 0)))
    # (bb, T_pad*B_blk, E): each chunk is one contiguous 2-D slab for the kernel.
    x = emb.reshape(batch_blocks, T_pad * B_blk, E)

    # ---- weights: transpose, gate-pack into lane-aligned Hp columns, pad rows ----
    wih_p = _pack_gate_cols(w_ih.T, H, Hp).astype(matmul_dtype)          # (E, 4Hp)
    whh_p = _pack_gate_cols(w_hh.T, H, Hp)                               # (H, 4Hp)
    whh_p = (jnp.zeros((Hp, 4 * Hp), whh_p.dtype).at[:H].set(whh_p)
             .astype(hh_dtype))                                          # (Hp, 4Hp)
    b_p = _pack_gate_cols(bias.reshape(1, -1).astype(jnp.float32), H, Hp)  # (1, 4Hp)

    # ---- initial state, padded (f32 carries; padded cols MUST be 0) ----
    def pad_state(s):
        return jnp.zeros((B_pad, Hp), jnp.float32).at[:B, :H].set(
            s[0].astype(jnp.float32))

    h0_p, c0_p = pad_state(h0), pad_state(c0)

    # ---- VMEM budget (drives vmem_limit_bytes) -------------------------------
    mm_is = jnp.dtype(matmul_dtype).itemsize
    hh_is = jnp.dtype(hh_dtype).itemsize
    vmem_need = (
        2 * Tc * B_blk * E * mm_is        # x chunk (double-buffered input)
        + E * 4 * Hp * mm_is              # W_ih^T  (single-buffered)
        + Hp * 4 * Hp * hh_is             # W_hh^T  (single-buffered)
        + 4 * Hp * 4                      # bias    (single-buffered)
        + 2 * B_blk * Hp * 4              # h0, c0  (single-buffered)
        + 2 * 2 * B_blk * Hp * 4          # h_out, c_out (double-buffered)
        + Tc * B_blk * 4 * Hp * 4         # gx_sc scratch
        + 2 * B_blk * Hp * 4              # h/c carry scratch
    )
    vmem_limit = min(int(vmem_need * 1.5) + (8 << 20), 96 << 20)

    one_buf = pl.Buffered(1)              # grid-invariant operands: single-buffer

    grid_spec = pltpu.PrefetchScalarGridSpec(
        num_scalar_prefetch=0,
        grid=(batch_blocks, n_chunks),    # (batch blocks, serial time chunks)
        in_specs=[
            pl.BlockSpec((pl.Squeezed(), Tc * B_blk, E), lambda b, c: (b, c, 0)),
            pl.BlockSpec((B_blk, Hp), lambda b, c: (b, 0),
                         pipeline_mode=one_buf),                   # h0
            pl.BlockSpec((B_blk, Hp), lambda b, c: (b, 0),
                         pipeline_mode=one_buf),                   # c0
            pl.BlockSpec((E, 4 * Hp), lambda b, c: (0, 0),
                         pipeline_mode=one_buf),                   # W_ih^T (packed)
            pl.BlockSpec((Hp, 4 * Hp), lambda b, c: (0, 0),
                         pipeline_mode=one_buf),                   # W_hh^T (packed)
            pl.BlockSpec((1, 4 * Hp), lambda b, c: (0, 0),
                         pipeline_mode=one_buf),                   # bias   (packed)
        ],
        out_specs=(
            pl.BlockSpec((B_blk, Hp), lambda b, c: (b, 0)),        # h_n
            pl.BlockSpec((B_blk, Hp), lambda b, c: (b, 0)),        # c_n
        ),
        scratch_shapes=[
            pltpu.VMEM((Tc * B_blk, 4 * Hp), jnp.float32),   # chunk input-gate buffer
            pltpu.VMEM((B_blk, Hp), jnp.float32),            # h carry (f32)
            pltpu.VMEM((B_blk, Hp), jnp.float32),            # c carry (f32)
        ],
    )

    # Batch axis: CORE_PARALLEL only when actually split (v7x 2-TC sharding);
    # otherwise a size-1 "arbitrary" axis (no extra cost on single-TC chips).
    batch_sem = pltpu.CORE_PARALLEL if batch_blocks > 1 else pltpu.ARBITRARY

    h_n, c_n = pl.pallas_call(
        functools.partial(lstm_chunk_kernel, seq_len=T, unroll=unroll),
        grid_spec=grid_spec,
        out_shape=(
            jax.ShapeDtypeStruct((B_pad, Hp), jnp.float32),
            jax.ShapeDtypeStruct((B_pad, Hp), jnp.float32),
        ),
        compiler_params=pltpu.CompilerParams(
            dimension_semantics=(batch_sem, pltpu.ARBITRARY),
            vmem_limit_bytes=vmem_limit,
        ),
    )(x, h0_p, c0_p, wih_p, whh_p, b_p)

    return h_n[:B, :H][None], c_n[:B, :H][None]          # (1, B, H) each


# -------------------------- pure-JAX reference -------------------------------
def lstm_reference(x_tokens, h0, c0, params):
    emb = jnp.take(params["emb_weight"], x_tokens, axis=0)   # (B, T, E)
    w_ih, w_hh = params["w_ih"], params["w_hh"]
    b = params["b_ih"] + params["b_hh"]
    H = w_hh.shape[1]

    def step(carry, x_t):
        h, c = carry
        gates = x_t @ w_ih.T + h @ w_hh.T + b
        i = jax.nn.sigmoid(gates[:, 0 * H:1 * H])
        f = jax.nn.sigmoid(gates[:, 1 * H:2 * H])
        g = jnp.tanh(gates[:, 2 * H:3 * H])
        o = jax.nn.sigmoid(gates[:, 3 * H:4 * H])
        c_new = f * c + i * g
        h_new = o * jnp.tanh(c_new)
        return (h_new, c_new), None

    (h_n, c_n), _ = jax.lax.scan(step, (h0[0], c0[0]),
                                 jnp.transpose(emb, (1, 0, 2)))
    return h_n[None], c_n[None]


# ----------------------------------- main ------------------------------------
if __name__ == "__main__":
    # Small synthetic config (args): vocab_size=16, emb_size=32, hidden_size=32,
    # layer_num=1, rnn_type='LSTM', one_hot=False, weight_tie=False.
    V, E, H = 16, 32, 32
    B, T = 2, 8

    key = jax.random.PRNGKey(0)
    k_emb, k_wih, k_whh, k_bih, k_bhh, k_x, k_h, k_c = jax.random.split(key, 8)
    bound = 1.0 / jnp.sqrt(H)
    params = {
        "emb_weight": jax.random.normal(k_emb, (V, E), jnp.float32),
        "w_ih": jax.random.uniform(k_wih, (4 * H, E), jnp.float32, -bound, bound),
        "w_hh": jax.random.uniform(k_whh, (4 * H, H), jnp.float32, -bound, bound),
        "b_ih": jax.random.uniform(k_bih, (4 * H,), jnp.float32, -bound, bound),
        "b_hh": jax.random.uniform(k_bhh, (4 * H,), jnp.float32, -bound, bound),
    }

    x_tokens = jax.random.randint(k_x, (B, T), 0, V, dtype=jnp.int32)
    # init_hidden() returns zeros; use small nonzero states here to also exercise
    # the carry-initialization path (forward accepts arbitrary `hidden`).
    h0 = 0.1 * jax.random.normal(k_h, (1, B, H), jnp.float32)
    c0 = 0.1 * jax.random.normal(k_c, (1, B, H), jnp.float32)

    h_ref, c_ref = lstm_reference(x_tokens, h0, c0, params)

    # f32 matmul path.
    h_n, c_n = rnn_model_forward(x_tokens, h0, c0, params,
                                 matmul_dtype=jnp.float32)
    jax.block_until_ready((h_n, c_n))
    assert h_n.shape == (1, B, H) and c_n.shape == (1, B, H)
    assert jnp.allclose(h_n, h_ref, atol=1e-2, rtol=1e-2)
    assert jnp.allclose(c_n, c_ref, atol=1e-2, rtol=1e-2)

    # Default path (bf16 matmuls on all generations, f32 carries / gate math).
    h_b, c_b = rnn_model_forward(x_tokens, h0, c0, params)
    jax.block_until_ready((h_b, c_b))
    assert jnp.allclose(h_b, h_ref, atol=3e-2, rtol=3e-2)
    assert jnp.allclose(c_b, c_ref, atol=3e-2, rtol=3e-2)

    # Ragged-tail path: Tc=3 does not divide T=8 -> exercises the predicated
    # last chunk (previously this collapsed to Tc=1).
    h_r, c_r = rnn_model_forward(x_tokens, h0, c0, params,
                                 matmul_dtype=jnp.float32, max_chunk=3)
    jax.block_until_ready((h_r, c_r))
    assert jnp.allclose(h_r, h_ref, atol=1e-2, rtol=1e-2)
    assert jnp.allclose(c_r, c_ref, atol=1e-2, rtol=1e-2)

    # batch_blocks heuristic path: request a split with tiny B -> collapses to 1.
    h_s, c_s = rnn_model_forward(x_tokens, h0, c0, params, batch_blocks=4)
    jax.block_until_ready((h_s, c_s))
    assert jnp.allclose(h_s, h_ref, atol=3e-2, rtol=3e-2)

    print("KERNEL_OK")
</pallas_src>

<mosaic_0001>
module attributes {stable_mosaic.version = 11 : i64} {
  func.func @lstm_chunk_kernel(%arg0: i32, %arg1: i32, %arg2: memref<1x64x32xf32, #tpu.memory_space<vmem>>, %arg3: memref<8x128xf32, #tpu.memory_space<vmem>>, %arg4: memref<8x128xf32, #tpu.memory_space<vmem>>, %arg5: memref<32x512xf32, #tpu.memory_space<vmem>>, %arg6: memref<128x512xf32, #tpu.memory_space<vmem>>, %arg7: memref<1x512xf32, #tpu.memory_space<vmem>>, %arg8: memref<8x128xf32, #tpu.memory_space<vmem>>, %arg9: memref<8x128xf32, #tpu.memory_space<vmem>>, %arg10: memref<64x512xf32, #tpu.memory_space<vmem>>, %arg11: memref<8x128xf32, #tpu.memory_space<vmem>>, %arg12: memref<8x128xf32, #tpu.memory_space<vmem>>) attributes {dimension_semantics = [#tpu.dimension_semantics<arbitrary>, #tpu.dimension_semantics<arbitrary>], iteration_bounds = array<i64: 1, 1>, scalar_prefetch = 0 : i64, scratch_operands = 3 : i64, tpu.core_type = #tpu.core_type<tc>, window_params = [{transform_indices = @transform_0, window_bounds = array<i64: 1, 64, 32>}, {pipeline_mode = #tpu.pipeline_mode<synchronous>, transform_indices = @transform_1, window_bounds = array<i64: 8, 128>}, {pipeline_mode = #tpu.pipeline_mode<synchronous>, transform_indices = @transform_2, window_bounds = array<i64: 8, 128>}, {pipeline_mode = #tpu.pipeline_mode<synchronous>, transform_indices = @transform_3, window_bounds = array<i64: 32, 512>}, {pipeline_mode = #tpu.pipeline_mode<synchronous>, transform_indices = @transform_4, window_bounds = array<i64: 128, 512>}, {pipeline_mode = #tpu.pipeline_mode<synchronous>, transform_indices = @transform_5, window_bounds = array<i64: 1, 512>}, {transform_indices = @transform_6, window_bounds = array<i64: 8, 128>}, {transform_indices = @transform_7, window_bounds = array<i64: 8, 128>}]} {
    %c0_i32 = arith.constant 0 : i32
    %0 = arith.cmpi eq, %arg1, %c0_i32 : i32
    %1 = arith.extui %0 : i1 to i32
    %c0_i32_0 = arith.constant 0 : i32
    %2 = arith.cmpi ne, %1, %c0_i32_0 : i32
    scf.if %2 {
      %c0_135 = arith.constant 0 : index
      %c0_136 = arith.constant 0 : index
      %349 = vector.load %arg3[%c0_135, %c0_136] : memref<8x128xf32, #tpu.memory_space<vmem>>, vector<8x128xf32>
      %c0_137 = arith.constant 0 : index
      %c0_138 = arith.constant 0 : index
      %350 = vector.load %arg11[%c0_137, %c0_138] : memref<8x128xf32, #tpu.memory_space<vmem>>, vector<8x128xf32>
      tpu.vector_store %arg11[%c0_137, %c0_138], %349 {strides = array<i32>} : memref<8x128xf32, #tpu.memory_space<vmem>>, vector<8x128xf32>,
      %c0_139 = arith.constant 0 : index
      %c0_140 = arith.constant 0 : index
      %351 = vector.load %arg4[%c0_139, %c0_140] : memref<8x128xf32, #tpu.memory_space<vmem>>, vector<8x128xf32>
      %c0_141 = arith.constant 0 : index
      %c0_142 = arith.constant 0 : index
      %352 = vector.load %arg12[%c0_141, %c0_142] : memref<8x128xf32, #tpu.memory_space<vmem>>, vector<8x128xf32>
      tpu.vector_store %arg12[%c0_141, %c0_142], %351 {strides = array<i32>} : memref<8x128xf32, #tpu.memory_space<vmem>>, vector<8x128xf32>,
    } else {
    }
    %c0 = arith.constant 0 : index
    %c0_1 = arith.constant 0 : index
    %c0_2 = arith.constant 0 : index
    %3 = vector.load %arg2[%c0, %c0_1, %c0_2] : memref<1x64x32xf32, #tpu.memory_space<vmem>>, vector<1x64x32xf32>
    %4 = vector.shape_cast %3 : vector<1x64x32xf32> to vector<64x32xf32>
    %c0_3 = arith.constant 0 : index
    %c0_4 = arith.constant 0 : index
    %5 = vector.load %arg5[%c0_3, %c0_4] : memref<32x512xf32, #tpu.memory_space<vmem>>, vector<32x512xf32>
    %cst = arith.constant dense<0.000000e+00> : vector<64x512xf32>
    %6 = tpu.matmul %4, %5, %cst {dimension_numbers = #tpu.dot_dimension_numbers<[1], [0], [0], [1], [0, 0, 1, 1], [], []>} : vector<64x32xf32>, vector<32x512xf32>, vector<64x512xf32> -> vector<64x512xf32>
    %c0_5 = arith.constant 0 : index
    %c0_6 = arith.constant 0 : index
    %7 = vector.load %arg7[%c0_5, %c0_6] : memref<1x512xf32, #tpu.memory_space<vmem>>, vector<1x512xf32>
    %8 = vector.broadcast %7 : vector<1x512xf32> to vector<64x512xf32>
    %9 = arith.addf %6, %8 : vector<64x512xf32>
    %c0_7 = arith.constant 0 : index
    %c0_8 = arith.constant 0 : index
    %10 = vector.load %arg10[%c0_7, %c0_8] : memref<64x512xf32, #tpu.memory_space<vmem>>, vector<64x512xf32>
    tpu.vector_store %arg10[%c0_7, %c0_8], %9 {strides = array<i32>} : memref<64x512xf32, #tpu.memory_space<vmem>>, vector<64x512xf32>,
    %c8_i32 = arith.constant 8 : i32
    %11 = arith.muli %arg1, %c8_i32 : i32
    %c8_i32_9 = arith.constant 8 : i32
    %12 = arith.subi %c8_i32_9, %11 : i32
    %c8_i32_10 = arith.constant 8 : i32
    %13 = arith.minsi %c8_i32_10, %12 : i32
    %c0_11 = arith.constant 0 : index
    %c0_12 = arith.constant 0 : index
    %14 = vector.load %arg11[%c0_11, %c0_12] : memref<8x128xf32, #tpu.memory_space<vmem>>, vector<8x128xf32>
    %c0_13 = arith.constant 0 : index
    %c0_14 = arith.constant 0 : index
    %15 = vector.load %arg12[%c0_13, %c0_14] : memref<8x128xf32, #tpu.memory_space<vmem>>, vector<8x128xf32>
    %c0_i32_15 = arith.constant 0 : i32
    %c8_i32_16 = arith.constant 8 : i32
    %16 = arith.muli %c0_i32_15, %c8_i32_16 : i32
    %17 = tpu.assume_multiple %16, 8 : i32
    %18 = arith.index_cast %17 : i32 to index
    %c0_17 = arith.constant 0 : index
    %19 = vector.load %arg10[%18, %c0_17] : memref<64x512xf32, #tpu.memory_space<vmem>>, vector<8x512xf32>
    %c0_18 = arith.constant 0 : index
    %c0_19 = arith.constant 0 : index
    %20 = vector.load %arg6[%c0_18, %c0_19] : memref<128x512xf32, #tpu.memory_space<vmem>>, vector<128x512xf32>
    %cst_20 = arith.constant dense<0.000000e+00> : vector<8x512xf32>
    %21 = tpu.matmul %14, %20, %cst_20 {dimension_numbers = #tpu.dot_dimension_numbers<[1], [0], [0], [1], [0, 0, 1, 1], [], []>} : vector<8x128xf32>, vector<128x512xf32>, vector<8x512xf32> -> vector<8x512xf32>
    %22 = arith.addf %19, %21 : vector<8x512xf32>
    %23 = vector.extract_strided_slice %22 {offsets = [0, 0], sizes = [8, 128], strides = [1, 1]} : vector<8x512xf32> to vector<8x128xf32>
    %cst_21 = arith.constant 5.000000e-01 : f32
    %24 = vector.broadcast %cst_21 : f32 to vector<8x128xf32>
    %25 = arith.mulf %24, %23 : vector<8x128xf32>
    %26 = math.tanh %25 : vector<8x128xf32>
    %cst_22 = arith.constant 1.000000e+00 : f32
    %27 = vector.broadcast %cst_22 : f32 to vector<8x128xf32>
    %28 = arith.addf %26, %27 : vector<8x128xf32>
    %cst_23 = arith.constant 5.000000e-01 : f32
    %29 = vector.broadcast %cst_23 : f32 to vector<8x128xf32>
    %30 = arith.mulf %29, %28 : vector<8x128xf32>
    %31 = vector.extract_strided_slice %22 {offsets = [0, 128], sizes = [8, 128], strides = [1, 1]} : vector<8x512xf32> to vector<8x128xf32>
    %cst_24 = arith.constant 5.000000e-01 : f32
    %32 = vector.broadcast %cst_24 : f32 to vector<8x128xf32>
    %33 = arith.mulf %32, %31 : vector<8x128xf32>
    %34 = math.tanh %33 : vector<8x128xf32>
    %cst_25 = arith.constant 1.000000e+00 : f32
    %35 = vector.broadcast %cst_25 : f32 to vector<8x128xf32>
    %36 = arith.addf %34, %35 : vector<8x128xf32>
    %cst_26 = arith.constant 5.000000e-01 : f32
    %37 = vector.broadcast %cst_26 : f32 to vector<8x128xf32>
    %38 = arith.mulf %37, %36 : vector<8x128xf32>
    %39 = vector.extract_strided_slice %22 {offsets = [0, 256], sizes = [8, 128], strides = [1, 1]} : vector<8x512xf32> to vector<8x128xf32>
    %40 = math.tanh %39 : vector<8x128xf32>
    %41 = vector.extract_strided_slice %22 {offsets = [0, 384], sizes = [8, 128], strides = [1, 1]} : vector<8x512xf32> to vector<8x128xf32>
    %cst_27 = arith.constant 5.000000e-01 : f32
    %42 = vector.broadcast %cst_27 : f32 to vector<8x128xf32>
    %43 = arith.mulf %42, %41 : vector<8x128xf32>
    %44 = math.tanh %43 : vector<8x128xf32>
    %cst_28 = arith.constant 1.000000e+00 : f32
    %45 = vector.broadcast %cst_28 : f32 to vector<8x128xf32>
    %46 = arith.addf %44, %45 : vector<8x128xf32>
    %cst_29 = arith.constant 5.000000e-01 : f32
    %47 = vector.broadcast %cst_29 : f32 to vector<8x128xf32>
    %48 = arith.mulf %47, %46 : vector<8x128xf32>
    %49 = arith.mulf %38, %15 : vector<8x128xf32>
    %50 = arith.mulf %30, %40 : vector<8x128xf32>
    %51 = arith.addf %49, %50 : vector<8x128xf32>
    %52 = math.tanh %51 : vector<8x128xf32>
    %53 = arith.mulf %48, %52 : vector<8x128xf32>
    %54 = arith.cmpi slt, %c0_i32_15, %13 : i32
    %55 = arith.select %54, %53, %14 : vector<8x128xf32>
    %56 = arith.select %54, %51, %15 : vector<8x128xf32>
    %c1_i32 = arith.constant 1 : i32
    %c8_i32_30 = arith.constant 8 : i32
    %57 = arith.muli %c1_i32, %c8_i32_30 : i32
    %58 = tpu.assume_multiple %57, 8 : i32
    %59 = arith.index_cast %58 : i32 to index
    %c0_31 = arith.constant 0 : index
    %60 = vector.load %arg10[%59, %c0_31] : memref<64x512xf32, #tpu.memory_space<vmem>>, vector<8x512xf32>
    %c0_32 = arith.constant 0 : index
    %c0_33 = arith.constant 0 : index
    %61 = vector.load %arg6[%c0_32, %c0_33] : memref<128x512xf32, #tpu.memory_space<vmem>>, vector<128x512xf32>
    %cst_34 = arith.constant dense<0.000000e+00> : vector<8x512xf32>
    %62 = tpu.matmul %55, %61, %cst_34 {dimension_numbers = #tpu.dot_dimension_numbers<[1], [0], [0], [1], [0, 0, 1, 1], [], []>} : vector<8x128xf32>, vector<128x512xf32>, vector<8x512xf32> -> vector<8x512xf32>
    %63 = arith.addf %60, %62 : vector<8x512xf32>
    %64 = vector.extract_strided_slice %63 {offsets = [0, 0], sizes = [8, 128], strides = [1, 1]} : vector<8x512xf32> to vector<8x128xf32>
    %cst_35 = arith.constant 5.000000e-01 : f32
    %65 = vector.broadcast %cst_35 : f32 to vector<8x128xf32>
    %66 = arith.mulf %65, %64 : vector<8x128xf32>
    %67 = math.tanh %66 : vector<8x128xf32>
    %cst_36 = arith.constant 1.000000e+00 : f32
    %68 = vector.broadcast %cst_36 : f32 to vector<8x128xf32>
    %69 = arith.addf %67, %68 : vector<8x128xf32>
    %cst_37 = arith.constant 5.000000e-01 : f32
    %70 = vector.broadcast %cst_37 : f32 to vector<8x128xf32>
    %71 = arith.mulf %70, %69 : vector<8x128xf32>
    %72 = vector.extract_strided_slice %63 {offsets = [0, 128], sizes = [8, 128], strides = [1, 1]} : vector<8x512xf32> to vector<8x128xf32>
    %cst_38 = arith.constant 5.000000e-01 : f32
    %73 = vector.broadcast %cst_38 : f32 to vector<8x128xf32>
    %74 = arith.mulf %73, %72 : vector<8x128xf32>
    %75 = math.tanh %74 : vector<8x128xf32>
    %cst_39 = arith.constant 1.000000e+00 : f32
    %76 = vector.broadcast %cst_39 : f32 to vector<8x128xf32>
    %77 = arith.addf %75, %76 : vector<8x128xf32>
    %cst_40 = arith.constant 5.000000e-01 : f32
    %78 = vector.broadcast %cst_40 : f32 to vector<8x128xf32>
    %79 = arith.mulf %78, %77 : vector<8x128xf32>
    %80 = vector.extract_strided_slice %63 {offsets = [0, 256], sizes = [8, 128], strides = [1, 1]} : vector<8x512xf32> to vector<8x128xf32>
    %81 = math.tanh %80 : vector<8x128xf32>
    %82 = vector.extract_strided_slice %63 {offsets = [0, 384], sizes = [8, 128], strides = [1, 1]} : vector<8x512xf32> to vector<8x128xf32>
    %cst_41 = arith.constant 5.000000e-01 : f32
    %83 = vector.broadcast %cst_41 : f32 to vector<8x128xf32>
    %84 = arith.mulf %83, %82 : vector<8x128xf32>
    %85 = math.tanh %84 : vector<8x128xf32>
    %cst_42 = arith.constant 1.000000e+00 : f32
    %86 = vector.broadcast %cst_42 : f32 to vector<8x128xf32>
    %87 = arith.addf %85, %86 : vector<8x128xf32>
    %cst_43 = arith.constant 5.000000e-01 : f32
    %88 = vector.broadcast %cst_43 : f32 to vector<8x128xf32>
    %89 = arith.mulf %88, %87 : vector<8x128xf32>
    %90 = arith.mulf %79, %56 : vector<8x128xf32>
    %91 = arith.mulf %71, %81 : vector<8x128xf32>
    %92 = arith.addf %90, %91 : vector<8x128xf32>
    %93 = math.tanh %92 : vector<8x128xf32>
    %94 = arith.mulf %89, %93 : vector<8x128xf32>
    %95 = arith.cmpi slt, %c1_i32, %13 : i32
    %96 = arith.select %95, %94, %55 : vector<8x128xf32>
    %97 = arith.select %95, %92, %56 : vector<8x128xf32>
    %c2_i32 = arith.constant 2 : i32
    %c8_i32_44 = arith.constant 8 : i32
    %98 = arith.muli %c2_i32, %c8_i32_44 : i32
    %99 = tpu.assume_multiple %98, 8 : i32
    %100 = arith.index_cast %99 : i32 to index
    %c0_45 = arith.constant 0 : index
    %101 = vector.load %arg10[%100, %c0_45] : memref<64x512xf32, #tpu.memory_space<vmem>>, vector<8x512xf32>
    %c0_46 = arith.constant 0 : index
    %c0_47 = arith.constant 0 : index
    %102 = vector.load %arg6[%c0_46, %c0_47] : memref<128x512xf32, #tpu.memory_space<vmem>>, vector<128x512xf32>
    %cst_48 = arith.constant dense<0.000000e+00> : vector<8x512xf32>
    %103 = tpu.matmul %96, %102, %cst_48 {dimension_numbers = #tpu.dot_dimension_numbers<[1], [0], [0], [1], [0, 0, 1, 1], [], []>} : vector<8x128xf32>, vector<128x512xf32>, vector<8x512xf32> -> vector<8x512xf32>
    %104 = arith.addf %101, %103 : vector<8x512xf32>
    %105 = vector.extract_strided_slice %104 {offsets = [0, 0], sizes = [8, 128], strides = [1, 1]} : vector<8x512xf32> to vector<8x128xf32>
    %cst_49 = arith.constant 5.000000e-01 : f32
    %106 = vector.broadcast %cst_49 : f32 to vector<8x128xf32>
    %107 = arith.mulf %106, %105 : vector<8x128xf32>
    %108 = math.tanh %107 : vector<8x128xf32>
    %cst_50 = arith.constant 1.000000e+00 : f32
    %109 = vector.broadcast %cst_50 : f32 to vector<8x128xf32>
    %110 = arith.addf %108, %109 : vector<8x128xf32>
    %cst_51 = arith.constant 5.000000e-01 : f32
    %111 = vector.broadcast %cst_51 : f32 to vector<8x128xf32>
    %112 = arith.mulf %111, %110 : vector<8x128xf32>
    %113 = vector.extract_strided_slice %104 {offsets = [0, 128], sizes = [8, 128], strides = [1, 1]} : vector<8x512xf32> to vector<8x128xf32>
    %cst_52 = arith.constant 5.000000e-01 : f32
    %114 = vector.broadcast %cst_52 : f32 to vector<8x128xf32>
    %115 = arith.mulf %114, %113 : vector<8x128xf32>
    %116 = math.tanh %115 : vector<8x128xf32>
    %cst_53 = arith.constant 1.000000e+00 : f32
    %117 = vector.broadcast %cst_53 : f32 to vector<8x128xf32>
    %118 = arith.addf %116, %117 : vector<8x128xf32>
    %cst_54 = arith.constant 5.000000e-01 : f32
    %119 = vector.broadcast %cst_54 : f32 to vector<8x128xf32>
    %120 = arith.mulf %119, %118 : vector<8x128xf32>
    %121 = vector.extract_strided_slice %104 {offsets = [0, 256], sizes = [8, 128], strides = [1, 1]} : vector<8x512xf32> to vector<8x128xf32>
    %122 = math.tanh %121 : vector<8x128xf32>
    %123 = vector.extract_strided_slice %104 {offsets = [0, 384], sizes = [8, 128], strides = [1, 1]} : vector<8x512xf32> to vector<8x128xf32>
    %cst_55 = arith.constant 5.000000e-01 : f32
    %124 = vector.broadcast %cst_55 : f32 to vector<8x128xf32>
    %125 = arith.mulf %124, %123 : vector<8x128xf32>
    %126 = math.tanh %125 : vector<8x128xf32>
    %cst_56 = arith.constant 1.000000e+00 : f32
    %127 = vector.broadcast %cst_56 : f32 to vector<8x128xf32>
    %128 = arith.addf %126, %127 : vector<8x128xf32>
    %cst_57 = arith.constant 5.000000e-01 : f32
    %129 = vector.broadcast %cst_57 : f32 to vector<8x128xf32>
    %130 = arith.mulf %129, %128 : vector<8x128xf32>
    %131 = arith.mulf %120, %97 : vector<8x128xf32>
    %132 = arith.mulf %112, %122 : vector<8x128xf32>
    %133 = arith.addf %131, %132 : vector<8x128xf32>
    %134 = math.tanh %133 : vector<8x128xf32>
    %135 = arith.mulf %130, %134 : vector<8x128xf32>
    %136 = arith.cmpi slt, %c2_i32, %13 : i32
    %137 = arith.select %136, %135, %96 : vector<8x128xf32>
    %138 = arith.select %136, %133, %97 : vector<8x128xf32>
    %c3_i32 = arith.constant 3 : i32
    %c8_i32_58 = arith.constant 8 : i32
    %139 = arith.muli %c3_i32, %c8_i32_58 : i32
    %140 = tpu.assume_multiple %139, 8 : i32
    %141 = arith.index_cast %140 : i32 to index
    %c0_59 = arith.constant 0 : index
    %142 = vector.load %arg10[%141, %c0_59] : memref<64x512xf32, #tpu.memory_space<vmem>>, vector<8x512xf32>
    %c0_60 = arith.constant 0 : index
    %c0_61 = arith.constant 0 : index
    %143 = vector.load %arg6[%c0_60, %c0_61] : memref<128x512xf32, #tpu.memory_space<vmem>>, vector<128x512xf32>
    %cst_62 = arith.constant dense<0.000000e+00> : vector<8x512xf32>
    %144 = tpu.matmul %137, %143, %cst_62 {dimension_numbers = #tpu.dot_dimension_numbers<[1], [0], [0], [1], [0, 0, 1, 1], [], []>} : vector<8x128xf32>, vector<128x512xf32>, vector<8x512xf32> -> vector<8x512xf32>
    %145 = arith.addf %142, %144 : vector<8x512xf32>
    %146 = vector.extract_strided_slice %145 {offsets = [0, 0], sizes = [8, 128], strides = [1, 1]} : vector<8x512xf32> to vector<8x128xf32>
    %cst_63 = arith.constant 5.000000e-01 : f32
    %147 = vector.broadcast %cst_63 : f32 to vector<8x128xf32>
    %148 = arith.mulf %147, %146 : vector<8x128xf32>
    %149 = math.tanh %148 : vector<8x128xf32>
    %cst_64 = arith.constant 1.000000e+00 : f32
    %150 = vector.broadcast %cst_64 : f32 to vector<8x128xf32>
    %151 = arith.addf %149, %150 : vector<8x128xf32>
    %cst_65 = arith.constant 5.000000e-01 : f32
    %152 = vector.broadcast %cst_65 : f32 to vector<8x128xf32>
    %153 = arith.mulf %152, %151 : vector<8x128xf32>
    %154 = vector.extract_strided_slice %145 {offsets = [0, 128], sizes = [8, 128], strides = [1, 1]} : vector<8x512xf32> to vector<8x128xf32>
    %cst_66 = arith.constant 5.000000e-01 : f32
    %155 = vector.broadcast %cst_66 : f32 to vector<8x128xf32>
    %156 = arith.mulf %155, %154 : vector<8x128xf32>
    %157 = math.tanh %156 : vector<8x128xf32>
    %cst_67 = arith.constant 1.000000e+00 : f32
    %158 = vector.broadcast %cst_67 : f32 to vector<8x128xf32>
    %159 = arith.addf %157, %158 : vector<8x128xf32>
    %cst_68 = arith.constant 5.000000e-01 : f32
    %160 = vector.broadcast %cst_68 : f32 to vector<8x128xf32>
    %161 = arith.mulf %160, %159 : vector<8x128xf32>
    %162 = vector.extract_strided_slice %145 {offsets = [0, 256], sizes = [8, 128], strides = [1, 1]} : vector<8x512xf32> to vector<8x128xf32>
    %163 = math.tanh %162 : vector<8x128xf32>
    %164 = vector.extract_strided_slice %145 {offsets = [0, 384], sizes = [8, 128], strides = [1, 1]} : vector<8x512xf32> to vector<8x128xf32>
    %cst_69 = arith.constant 5.000000e-01 : f32
    %165 = vector.broadcast %cst_69 : f32 to vector<8x128xf32>
    %166 = arith.mulf %165, %164 : vector<8x128xf32>
    %167 = math.tanh %166 : vector<8x128xf32>
    %cst_70 = arith.constant 1.000000e+00 : f32
    %168 = vector.broadcast %cst_70 : f32 to vector<8x128xf32>
    %169 = arith.addf %167, %168 : vector<8x128xf32>
    %cst_71 = arith.constant 5.000000e-01 : f32
    %170 = vector.broadcast %cst_71 : f32 to vector<8x128xf32>
    %171 = arith.mulf %170, %169 : vector<8x128xf32>
    %172 = arith.mulf %161, %138 : vector<8x128xf32>
    %173 = arith.mulf %153, %163 : vector<8x128xf32>
    %174 = arith.addf %172, %173 : vector<8x128xf32>
    %175 = math.tanh %174 : vector<8x128xf32>
    %176 = arith.mulf %171, %175 : vector<8x128xf32>
    %177 = arith.cmpi slt, %c3_i32, %13 : i32
    %178 = arith.select %177, %176, %137 : vector<8x128xf32>
    %179 = arith.select %177, %174, %138 : vector<8x128xf32>
    %c4_i32 = arith.constant 4 : i32
    %c8_i32_72 = arith.constant 8 : i32
    %180 = arith.muli %c4_i32, %c8_i32_72 : i32
    %181 = tpu.assume_multiple %180, 8 : i32
    %182 = arith.index_cast %181 : i32 to index
    %c0_73 = arith.constant 0 : index
    %183 = vector.load %arg10[%182, %c0_73] : memref<64x512xf32, #tpu.memory_space<vmem>>, vector<8x512xf32>
    %c0_74 = arith.constant 0 : index
    %c0_75 = arith.constant 0 : index
    %184 = vector.load %arg6[%c0_74, %c0_75] : memref<128x512xf32, #tpu.memory_space<vmem>>, vector<128x512xf32>
    %cst_76 = arith.constant dense<0.000000e+00> : vector<8x512xf32>
    %185 = tpu.matmul %178, %184, %cst_76 {dimension_numbers = #tpu.dot_dimension_numbers<[1], [0], [0], [1], [0, 0, 1, 1], [], []>} : vector<8x128xf32>, vector<128x512xf32>, vector<8x512xf32> -> vector<8x512xf32>
    %186 = arith.addf %183, %185 : vector<8x512xf32>
    %187 = vector.extract_strided_slice %186 {offsets = [0, 0], sizes = [8, 128], strides = [1, 1]} : vector<8x512xf32> to vector<8x128xf32>
    %cst_77 = arith.constant 5.000000e-01 : f32
    %188 = vector.broadcast %cst_77 : f32 to vector<8x128xf32>
    %189 = arith.mulf %188, %187 : vector<8x128xf32>
    %190 = math.tanh %189 : vector<8x128xf32>
    %cst_78 = arith.constant 1.000000e+00 : f32
    %191 = vector.broadcast %cst_78 : f32 to vector<8x128xf32>
    %192 = arith.addf %190, %191 : vector<8x128xf32>
    %cst_79 = arith.constant 5.000000e-01 : f32
    %193 = vector.broadcast %cst_79 : f32 to vector<8x128xf32>
    %194 = arith.mulf %193, %192 : vector<8x128xf32>
    %195 = vector.extract_strided_slice %186 {offsets = [0, 128], sizes = [8, 128], strides = [1, 1]} : vector<8x512xf32> to vector<8x128xf32>
    %cst_80 = arith.constant 5.000000e-01 : f32
    %196 = vector.broadcast %cst_80 : f32 to vector<8x128xf32>
    %197 = arith.mulf %196, %195 : vector<8x128xf32>
    %198 = math.tanh %197 : vector<8x128xf32>
    %cst_81 = arith.constant 1.000000e+00 : f32
    %199 = vector.broadcast %cst_81 : f32 to vector<8x128xf32>
    %200 = arith.addf %198, %199 : vector<8x128xf32>
    %cst_82 = arith.constant 5.000000e-01 : f32
    %201 = vector.broadcast %cst_82 : f32 to vector<8x128xf32>
    %202 = arith.mulf %201, %200 : vector<8x128xf32>
    %203 = vector.extract_strided_slice %186 {offsets = [0, 256], sizes = [8, 128], strides = [1, 1]} : vector<8x512xf32> to vector<8x128xf32>
    %204 = math.tanh %203 : vector<8x128xf32>
    %205 = vector.extract_strided_slice %186 {offsets = [0, 384], sizes = [8, 128], strides = [1, 1]} : vector<8x512xf32> to vector<8x128xf32>
    %cst_83 = arith.constant 5.000000e-01 : f32
    %206 = vector.broadcast %cst_83 : f32 to vector<8x128xf32>
    %207 = arith.mulf %206, %205 : vector<8x128xf32>
    %208 = math.tanh %207 : vector<8x128xf32>
    %cst_84 = arith.constant 1.000000e+00 : f32
    %209 = vector.broadcast %cst_84 : f32 to vector<8x128xf32>
    %210 = arith.addf %208, %209 : vector<8x128xf32>
    %cst_85 = arith.constant 5.000000e-01 : f32
    %211 = vector.broadcast %cst_85 : f32 to vector<8x128xf32>
    %212 = arith.mulf %211, %210 : vector<8x128xf32>
    %213 = arith.mulf %202, %179 : vector<8x128xf32>
    %214 = arith.mulf %194, %204 : vector<8x128xf32>
    %215 = arith.addf %213, %214 : vector<8x128xf32>
    %216 = math.tanh %215 : vector<8x128xf32>
    %217 = arith.mulf %212, %216 : vector<8x128xf32>
    %218 = arith.cmpi slt, %c4_i32, %13 : i32
    %219 = arith.select %218, %217, %178 : vector<8x128xf32>
    %220 = arith.select %218, %215, %179 : vector<8x128xf32>
    %c5_i32 = arith.constant 5 : i32
    %c8_i32_86 = arith.constant 8 : i32
    %221 = arith.muli %c5_i32, %c8_i32_86 : i32
    %222 = tpu.assume_multiple %221, 8 : i32
    %223 = arith.index_cast %222 : i32 to index
    %c0_87 = arith.constant 0 : index
    %224 = vector.load %arg10[%223, %c0_87] : memref<64x512xf32, #tpu.memory_space<vmem>>, vector<8x512xf32>
    %c0_88 = arith.constant 0 : index
    %c0_89 = arith.constant 0 : index
    %225 = vector.load %arg6[%c0_88, %c0_89] : memref<128x512xf32, #tpu.memory_space<vmem>>, vector<128x512xf32>
    %cst_90 = arith.constant dense<0.000000e+00> : vector<8x512xf32>
    %226 = tpu.matmul %219, %225, %cst_90 {dimension_numbers = #tpu.dot_dimension_numbers<[1], [0], [0], [1], [0, 0, 1, 1], [], []>} : vector<8x128xf32>, vector<128x512xf32>, vector<8x512xf32> -> vector<8x512xf32>
    %227 = arith.addf %224, %226 : vector<8x512xf32>
    %228 = vector.extract_strided_slice %227 {offsets = [0, 0], sizes = [8, 128], strides = [1, 1]} : vector<8x512xf32> to vector<8x128xf32>
    %cst_91 = arith.constant 5.000000e-01 : f32
    %229 = vector.broadcast %cst_91 : f32 to vector<8x128xf32>
    %230 = arith.mulf %229, %228 : vector<8x128xf32>
    %231 = math.tanh %230 : vector<8x128xf32>
    %cst_92 = arith.constant 1.000000e+00 : f32
    %232 = vector.broadcast %cst_92 : f32 to vector<8x128xf32>
    %233 = arith.addf %231, %232 : vector<8x128xf32>
    %cst_93 = arith.constant 5.000000e-01 : f32
    %234 = vector.broadcast %cst_93 : f32 to vector<8x128xf32>
    %235 = arith.mulf %234, %233 : vector<8x128xf32>
    %236 = vector.extract_strided_slice %227 {offsets = [0, 128], sizes = [8, 128], strides = [1, 1]} : vector<8x512xf32> to vector<8x128xf32>
    %cst_94 = arith.constant 5.000000e-01 : f32
    %237 = vector.broadcast %cst_94 : f32 to vector<8x128xf32>
    %238 = arith.mulf %237, %236 : vector<8x128xf32>
    %239 = math.tanh %238 : vector<8x128xf32>
    %cst_95 = arith.constant 1.000000e+00 : f32
    %240 = vector.broadcast %cst_95 : f32 to vector<8x128xf32>
    %241 = arith.addf %239, %240 : vector<8x128xf32>
    %cst_96 = arith.constant 5.000000e-01 : f32
    %242 = vector.broadcast %cst_96 : f32 to vector<8x128xf32>
    %243 = arith.mulf %242, %241 : vector<8x128xf32>
    %244 = vector.extract_strided_slice %227 {offsets = [0, 256], sizes = [8, 128], strides = [1, 1]} : vector<8x512xf32> to vector<8x128xf32>
    %245 = math.tanh %244 : vector<8x128xf32>
    %246 = vector.extract_strided_slice %227 {offsets = [0, 384], sizes = [8, 128], strides = [1, 1]} : vector<8x512xf32> to vector<8x128xf32>
    %cst_97 = arith.constant 5.000000e-01 : f32
    %247 = vector.broadcast %cst_97 : f32 to vector<8x128xf32>
    %248 = arith.mulf %247, %246 : vector<8x128xf32>
    %249 = math.tanh %248 : vector<8x128xf32>
    %cst_98 = arith.constant 1.000000e+00 : f32
    %250 = vector.broadcast %cst_98 : f32 to vector<8x128xf32>
    %251 = arith.addf %249, %250 : vector<8x128xf32>
    %cst_99 = arith.constant 5.000000e-01 : f32
    %252 = vector.broadcast %cst_99 : f32 to vector<8x128xf32>
    %253 = arith.mulf %252, %251 : vector<8x128xf32>
    %254 = arith.mulf %243, %220 : vector<8x128xf32>
    %255 = arith.mulf %235, %245 : vector<8x128xf32>
    %256 = arith.addf %254, %255 : vector<8x128xf32>
    %257 = math.tanh %256 : vector<8x128xf32>
    %258 = arith.mulf %253, %257 : vector<8x128xf32>
    %259 = arith.cmpi slt, %c5_i32, %13 : i32
    %260 = arith.select %259, %258, %219 : vector<8x128xf32>
    %261 = arith.select %259, %256, %220 : vector<8x128xf32>
    %c6_i32 = arith.constant 6 : i32
    %c8_i32_100 = arith.constant 8 : i32
    %262 = arith.muli %c6_i32, %c8_i32_100 : i32
    %263 = tpu.assume_multiple %262, 8 : i32
    %264 = arith.index_cast %263 : i32 to index
    %c0_101 = arith.constant 0 : index
    %265 = vector.load %arg10[%264, %c0_101] : memref<64x512xf32, #tpu.memory_space<vmem>>, vector<8x512xf32>
    %c0_102 = arith.constant 0 : index
    %c0_103 = arith.constant 0 : index
    %266 = vector.load %arg6[%c0_102, %c0_103] : memref<128x512xf32, #tpu.memory_space<vmem>>, vector<128x512xf32>
    %cst_104 = arith.constant dense<0.000000e+00> : vector<8x512xf32>
    %267 = tpu.matmul %260, %266, %cst_104 {dimension_numbers = #tpu.dot_dimension_numbers<[1], [0], [0], [1], [0, 0, 1, 1], [], []>} : vector<8x128xf32>, vector<128x512xf32>, vector<8x512xf32> -> vector<8x512xf32>
    %268 = arith.addf %265, %267 : vector<8x512xf32>
    %269 = vector.extract_strided_slice %268 {offsets = [0, 0], sizes = [8, 128], strides = [1, 1]} : vector<8x512xf32> to vector<8x128xf32>
    %cst_105 = arith.constant 5.000000e-01 : f32
    %270 = vector.broadcast %cst_105 : f32 to vector<8x128xf32>
    %271 = arith.mulf %270, %269 : vector<8x128xf32>
    %272 = math.tanh %271 : vector<8x128xf32>
    %cst_106 = arith.constant 1.000000e+00 : f32
    %273 = vector.broadcast %cst_106 : f32 to vector<8x128xf32>
    %274 = arith.addf %272, %273 : vector<8x128xf32>
    %cst_107 = arith.constant 5.000000e-01 : f32
    %275 = vector.broadcast %cst_107 : f32 to vector<8x128xf32>
    %276 = arith.mulf %275, %274 : vector<8x128xf32>
    %277 = vector.extract_strided_slice %268 {offsets = [0, 128], sizes = [8, 128], strides = [1, 1]} : vector<8x512xf32> to vector<8x128xf32>
    %cst_108 = arith.constant 5.000000e-01 : f32
    %278 = vector.broadcast %cst_108 : f32 to vector<8x128xf32>
    %279 = arith.mulf %278, %277 : vector<8x128xf32>
    %280 = math.tanh %279 : vector<8x128xf32>
    %cst_109 = arith.constant 1.000000e+00 : f32
    %281 = vector.broadcast %cst_109 : f32 to vector<8x128xf32>
    %282 = arith.addf %280, %281 : vector<8x128xf32>
    %cst_110 = arith.constant 5.000000e-01 : f32
    %283 = vector.broadcast %cst_110 : f32 to vector<8x128xf32>
    %284 = arith.mulf %283, %282 : vector<8x128xf32>
    %285 = vector.extract_strided_slice %268 {offsets = [0, 256], sizes = [8, 128], strides = [1, 1]} : vector<8x512xf32> to vector<8x128xf32>
    %286 = math.tanh %285 : vector<8x128xf32>
    %287 = vector.extract_strided_slice %268 {offsets = [0, 384], sizes = [8, 128], strides = [1, 1]} : vector<8x512xf32> to vector<8x128xf32>
    %cst_111 = arith.constant 5.000000e-01 : f32
    %288 = vector.broadcast %cst_111 : f32 to vector<8x128xf32>
    %289 = arith.mulf %288, %287 : vector<8x128xf32>
    %290 = math.tanh %289 : vector<8x128xf32>
    %cst_112 = arith.constant 1.000000e+00 : f32
    %291 = vector.broadcast %cst_112 : f32 to vector<8x128xf32>
    %292 = arith.addf %290, %291 : vector<8x128xf32>
    %cst_113 = arith.constant 5.000000e-01 : f32
    %293 = vector.broadcast %cst_113 : f32 to vector<8x128xf32>
    %294 = arith.mulf %293, %292 : vector<8x128xf32>
    %295 = arith.mulf %284, %261 : vector<8x128xf32>
    %296 = arith.mulf %276, %286 : vector<8x128xf32>
    %297 = arith.addf %295, %296 : vector<8x128xf32>
    %298 = math.tanh %297 : vector<8x128xf32>
    %299 = arith.mulf %294, %298 : vector<8x128xf32>
    %300 = arith.cmpi slt, %c6_i32, %13 : i32
    %301 = arith.select %300, %299, %260 : vector<8x128xf32>
    %302 = arith.select %300, %297, %261 : vector<8x128xf32>
    %c7_i32 = arith.constant 7 : i32
    %c8_i32_114 = arith.constant 8 : i32
    %303 = arith.muli %c7_i32, %c8_i32_114 : i32
    %304 = tpu.assume_multiple %303, 8 : i32
    %305 = arith.index_cast %304 : i32 to index
    %c0_115 = arith.constant 0 : index
    %306 = vector.load %arg10[%305, %c0_115] : memref<64x512xf32, #tpu.memory_space<vmem>>, vector<8x512xf32>
    %c0_116 = arith.constant 0 : index
    %c0_117 = arith.constant 0 : index
    %307 = vector.load %arg6[%c0_116, %c0_117] : memref<128x512xf32, #tpu.memory_space<vmem>>, vector<128x512xf32>
    %cst_118 = arith.constant dense<0.000000e+00> : vector<8x512xf32>
    %308 = tpu.matmul %301, %307, %cst_118 {dimension_numbers = #tpu.dot_dimension_numbers<[1], [0], [0], [1], [0, 0, 1, 1], [], []>} : vector<8x128xf32>, vector<128x512xf32>, vector<8x512xf32> -> vector<8x512xf32>
    %309 = arith.addf %306, %308 : vector<8x512xf32>
    %310 = vector.extract_strided_slice %309 {offsets = [0, 0], sizes = [8, 128], strides = [1, 1]} : vector<8x512xf32> to vector<8x128xf32>
    %cst_119 = arith.constant 5.000000e-01 : f32
    %311 = vector.broadcast %cst_119 : f32 to vector<8x128xf32>
    %312 = arith.mulf %311, %310 : vector<8x128xf32>
    %313 = math.tanh %312 : vector<8x128xf32>
    %cst_120 = arith.constant 1.000000e+00 : f32
    %314 = vector.broadcast %cst_120 : f32 to vector<8x128xf32>
    %315 = arith.addf %313, %314 : vector<8x128xf32>
    %cst_121 = arith.constant 5.000000e-01 : f32
    %316 = vector.broadcast %cst_121 : f32 to vector<8x128xf32>
    %317 = arith.mulf %316, %315 : vector<8x128xf32>
    %318 = vector.extract_strided_slice %309 {offsets = [0, 128], sizes = [8, 128], strides = [1, 1]} : vector<8x512xf32> to vector<8x128xf32>
    %cst_122 = arith.constant 5.000000e-01 : f32
    %319 = vector.broadcast %cst_122 : f32 to vector<8x128xf32>
    %320 = arith.mulf %319, %318 : vector<8x128xf32>
    %321 = math.tanh %320 : vector<8x128xf32>
    %cst_123 = arith.constant 1.000000e+00 : f32
    %322 = vector.broadcast %cst_123 : f32 to vector<8x128xf32>
    %323 = arith.addf %321, %322 : vector<8x128xf32>
    %cst_124 = arith.constant 5.000000e-01 : f32
    %324 = vector.broadcast %cst_124 : f32 to vector<8x128xf32>
    %325 = arith.mulf %324, %323 : vector<8x128xf32>
    %326 = vector.extract_strided_slice %309 {offsets = [0, 256], sizes = [8, 128], strides = [1, 1]} : vector<8x512xf32> to vector<8x128xf32>
    %327 = math.tanh %326 : vector<8x128xf32>
    %328 = vector.extract_strided_slice %309 {offsets = [0, 384], sizes = [8, 128], strides = [1, 1]} : vector<8x512xf32> to vector<8x128xf32>
    %cst_125 = arith.constant 5.000000e-01 : f32
    %329 = vector.broadcast %cst_125 : f32 to vector<8x128xf32>
    %330 = arith.mulf %329, %328 : vector<8x128xf32>
    %331 = math.tanh %330 : vector<8x128xf32>
    %cst_126 = arith.constant 1.000000e+00 : f32
    %332 = vector.broadcast %cst_126 : f32 to vector<8x128xf32>
    %333 = arith.addf %331, %332 : vector<8x128xf32>
    %cst_127 = arith.constant 5.000000e-01 : f32
    %334 = vector.broadcast %cst_127 : f32 to vector<8x128xf32>
    %335 = arith.mulf %334, %333 : vector<8x128xf32>
    %336 = arith.mulf %325, %302 : vector<8x128xf32>
    %337 = arith.mulf %317, %327 : vector<8x128xf32>
    %338 = arith.addf %336, %337 : vector<8x128xf32>
    %339 = math.tanh %338 : vector<8x128xf32>
    %340 = arith.mulf %335, %339 : vector<8x128xf32>
    %341 = arith.cmpi slt, %c7_i32, %13 : i32
    %342 = arith.select %341, %340, %301 : vector<8x128xf32>
    %343 = arith.select %341, %338, %302 : vector<8x128xf32>
    %c8_i32_128 = arith.constant 8 : i32
    %c0_129 = arith.constant 0 : index
    %c0_130 = arith.constant 0 : index
    %344 = vector.load %arg11[%c0_129, %c0_130] : memref<8x128xf32, #tpu.memory_space<vmem>>, vector<8x128xf32>
    tpu.vector_store %arg11[%c0_129, %c0_130], %342 {strides = array<i32>} : memref<8x128xf32, #tpu.memory_space<vmem>>, vector<8x128xf32>,
    %c0_131 = arith.constant 0 : index
    %c0_132 = arith.constant 0 : index
    %345 = vector.load %arg12[%c0_131, %c0_132] : memref<8x128xf32, #tpu.memory_space<vmem>>, vector<8x128xf32>
    tpu.vector_store %arg12[%c0_131, %c0_132], %343 {strides = array<i32>} : memref<8x128xf32, #tpu.memory_space<vmem>>, vector<8x128xf32>,
    %c0_i32_133 = arith.constant 0 : i32
    %346 = arith.cmpi eq, %arg1, %c0_i32_133 : i32
    %347 = arith.extui %346 : i1 to i32
    %c0_i32_134 = arith.constant 0 : i32
    %348 = arith.cmpi ne, %347, %c0_i32_134 : i32
    scf.if %348 {
      %c0_135 = arith.constant 0 : index
      %c0_136 = arith.constant 0 : index
      %349 = vector.load %arg8[%c0_135, %c0_136] : memref<8x128xf32, #tpu.memory_space<vmem>>, vector<8x128xf32>
      tpu.vector_store %arg8[%c0_135, %c0_136], %342 {strides = array<i32>} : memref<8x128xf32, #tpu.memory_space<vmem>>, vector<8x128xf32>,
      %c0_137 = arith.constant 0 : index
      %c0_138 = arith.constant 0 : index
      %350 = vector.load %arg9[%c0_137, %c0_138] : memref<8x128xf32, #tpu.memory_space<vmem>>, vector<8x128xf32>
      tpu.vector_store %arg9[%c0_137, %c0_138], %343 {strides = array<i32>} : memref<8x128xf32, #tpu.memory_space<vmem>>, vector<8x128xf32>,
    } else {
    }
    return
  }
  func.func @transform_0(%arg0: i32, %arg1: i32) -> (i32, i32, i32) {
    %c0_i32 = arith.constant 0 : i32
    %c0_i32_0 = arith.constant 0 : i32
    return %arg0, %arg1, %c0_i32 : i32, i32, i32
  }
  func.func @transform_1(%arg0: i32, %arg1: i32) -> (i32, i32) {
    %c0_i32 = arith.constant 0 : i32
    %c0_i32_0 = arith.constant 0 : i32
    return %arg0, %c0_i32 : i32, i32
  }
  func.func @transform_2(%arg0: i32, %arg1: i32) -> (i32, i32) {
    %c0_i32 = arith.constant 0 : i32
    %c0_i32_0 = arith.constant 0 : i32
    return %arg0, %c0_i32 : i32, i32
  }
  func.func @transform_3(%arg0: i32, %arg1: i32) -> (i32, i32) {
    %c0_i32 = arith.constant 0 : i32
    %c0_i32_0 = arith.constant 0 : i32
    %c0_i32_1 = arith.constant 0 : i32
    return %c0_i32, %c0_i32_0 : i32, i32
  }
  func.func @transform_4(%arg0: i32, %arg1: i32) -> (i32, i32) {
    %c0_i32 = arith.constant 0 : i32
    %c0_i32_0 = arith.constant 0 : i32
    %c0_i32_1 = arith.constant 0 : i32
    return %c0_i32, %c0_i32_0 : i32, i32
  }
  func.func @transform_5(%arg0: i32, %arg1: i32) -> (i32, i32) {
    %c0_i32 = arith.constant 0 : i32
    %c0_i32_0 = arith.constant 0 : i32
    %c0_i32_1 = arith.constant 0 : i32
    return %c0_i32, %c0_i32_0 : i32, i32
  }
  func.func @transform_6(%arg0: i32, %arg1: i32) -> (i32, i32) {
    %c0_i32 = arith.constant 0 : i32
    %c0_i32_0 = arith.constant 0 : i32
    return %arg0, %c0_i32 : i32, i32
  }
  func.func @transform_7(%arg0: i32, %arg1: i32) -> (i32, i32) {
    %c0_i32 = arith.constant 0 : i32
    %c0_i32_0 = arith.constant 0 : i32
    return %arg0, %c0_i32 : i32, i32
  }
}

</mosaic_0001>

<bundles_post_ra>
// kernel: rnn_model_forward.1
= control target key start
LH: loop header
LB: loop body
LE: loop exit
PB: predicated region body
PF: predicated region fallthrough
CT: control target
= control target key end

     0   :  { %vm67_vm0 = vcmask 261120   ;;  %s2917_s3 = inlined_call_operand.vmem [shape: f32[32,512], index: 3, kind: input, shape index: {}]   ;;  %s2918_s0 = inlined_call_operand.vmem [shape: f32[1,64,32], index: 0, kind: input, shape index: {}]   ;;  %s2919_s4 = inlined_call_operand.vmem [shape: f32[128,512], index: 4, kind: input, shape index: {}]   ;;  %s2920_s1 = inlined_call_operand.vmem [shape: f32[8,128], index: 1, kind: input, shape index: {}]   ;;  %s2921_s5 = inlined_call_operand.vmem [shape: f32[1,512], index: 5, kind: input, shape index: {}]   ;;  %s2922_s2 = inlined_call_operand.vmem [shape: f32[8,128], index: 2, kind: input, shape index: {}]   ;;  %s2923_s7 = inlined_call_operand.vmem [shape: f32[8,128], index: 7, kind: output, shape index: {1}]   ;;  %s2924_s6 = inlined_call_operand.vmem [shape: f32[8,128], index: 6, kind: output, shape index: {0}]  }
   0x1   :  { %v53_v0 = vld [vmem:[%s2917_s3 + $0x60] sm:$0xff]  ;;  %v54_v1 = vld [vmem:[%s2917_s3 + $0x68] sm:$0xff]  ;;  %v55_v2 = vld [vmem:[%s2917_s3 + $0x70] sm:$0xff] }
   0x2   :  { %104 = vmatpush.msra.mxu0 %v53_v0  ;;  %145 = vmatpush.msra.mxu1 %v54_v1  ;;  %v56_v3 = vld [vmem:[%s2917_s3 + $0x78] sm:$0xff]  ;;  %v49_v4 = vld [vmem:[%s2917_s3 + $0x40] sm:$0xff]  ;;  %v50_v5 = vld [vmem:[%s2917_s3 + $0x48] sm:$0xff] }
   0x3   :  { %186 = vmatpush.msra.mxu2 %v55_v2  ;;  %227 = vmatpush.msra.mxu3 %v56_v3  ;;  %v51_v6 = vld [vmem:[%s2917_s3 + $0x50] sm:$0xff]  ;;  %v52_v7 = vld [vmem:[%s2917_s3 + $0x58] sm:$0xff]  ;;  %v45_v8 = vld [vmem:[%s2917_s3 + $0x20] sm:$0xff] }
   0x4   :  { %105 = vmatpush.msra.mxu0 %v49_v4  ;;  %146 = vmatpush.msra.mxu1 %v50_v5  ;;  %v46_v9 = vld [vmem:[%s2917_s3 + $0x28] sm:$0xff]  ;;  %v47_v10 = vld [vmem:[%s2917_s3 + $0x30] sm:$0xff]  ;;  %v48_v11 = vld [vmem:[%s2917_s3 + $0x38] sm:$0xff] }
   0x5   :  { %187 = vmatpush.msra.mxu2 %v51_v6  ;;  %228 = vmatpush.msra.mxu3 %v52_v7  ;;  %v41_v12 = vld [vmem:[%s2917_s3] sm:$0xff]  ;;  %v42_v13 = vld [vmem:[%s2917_s3 + $0x8] sm:$0xff]  ;;  %v43_v14 = vld [vmem:[%s2917_s3 + $0x10] sm:$0xff] }
   0x6   :  { %106 = vmatpush.msra.mxu0 %v45_v8  ;;  %147 = vmatpush.msra.mxu1 %v46_v9  ;;  %v44_v15 = vld [vmem:[%s2917_s3 + $0x18] sm:$0xff]  ;;  %v33_v16 = vld [vmem:[%s2918_s0] sm:$0xff]  ;;  %v1575_v18 = vld [vmem:[%s2919_s4 + $0x1e8] sm:$0xff] }
   0x7   :  { %188 = vmatpush.msra.mxu2 %v47_v10  ;;  %229 = vmatpush.msra.mxu3 %v48_v11  ;;  %v1570_v17 = vld [vmem:[%s2919_s4 + $0x1e0] sm:$0xff]  ;;  %v1582_v19 = vld [vmem:[%s2919_s4 + $0x1f0] sm:$0xff]  ;;  %v1587_v20 = vld [vmem:[%s2919_s4 + $0x1f8] sm:$0xff] }
   0x8   :  { %107 = vmatpush.msra.mxu0 %v41_v12  ;;  %148 = vmatpush.msra.mxu1 %v42_v13  ;;  %v1594_v21 = vld [vmem:[%s2919_s4 + $0x1c0] sm:$0xff]  ;;  %v1599_v22 = vld [vmem:[%s2919_s4 + $0x1c8] sm:$0xff]  ;;  %v1606_v23 = vld [vmem:[%s2919_s4 + $0x1d0] sm:$0xff] }
   0x9   :  { %189 = vmatpush.msra.mxu2 %v43_v14  ;;  %230 = vmatpush.msra.mxu3 %v44_v15  ;;  %v1611_v24 = vld [vmem:[%s2919_s4 + $0x1d8] sm:$0xff]  ;;  %v1618_v25 = vld [vmem:[%s2919_s4 + $0x1a0] sm:$0xff]  ;;  %v1623_v26 = vld [vmem:[%s2919_s4 + $0x1a8] sm:$0xff] }
   0xa   :  { %1300 = vmatmul.msk.f32.vlgmr.msra.gmra.mxu0 %vm67_vm0, %v33_v16  ;;  %1308 = vmatmul.msk.f32.vlgmr.msra.gmra.mxu1 %vm67_vm0, %v33_v16  ;;  %v1630_v27 = vld [vmem:[%s2919_s4 + $0x1b0] sm:$0xff]  ;;  %v1635_v28 = vld [vmem:[%s2919_s4 + $0x1b8] sm:$0xff]  ;;  %v34_v29 = vld [vmem:[%s2918_s0 + $0x8] sm:$0xff] }
   0xb   :  { %1316 = vmatmul.msk.f32.vlgmr.msra.gmra.mxu2 %vm67_vm0, %v33_v16  ;;  %1324 = vmatmul.msk.f32.vlgmr.msra.gmra.mxu3 %vm67_vm0, %v33_v16  ;;  %v1648_v30 = vld [vmem:[%s2919_s4 + $0x180] sm:$0xff]  ;;  %v1653_v31 = vld [vmem:[%s2919_s4 + $0x188] sm:$0xff]  ;;  %v1661_v32 = vld [vmem:[%s2919_s4 + $0x190] sm:$0xff] }
   0xc   :  { %365 = vmatpush.msrb.mxu0 %v1570_v17  ;;  %385 = vmatpush.msrb.mxu1 %v1575_v18  ;;  %v1666_v33 = vld [vmem:[%s2919_s4 + $0x198] sm:$0xff]  ;;  %v1673_v34 = vld [vmem:[%s2919_s4 + $0x160] sm:$0xff]  ;;  %v1678_v35 = vld [vmem:[%s2919_s4 + $0x168] sm:$0xff] }
   0xd   :  { %405 = vmatpush.msrb.mxu2 %v1582_v19  ;;  %425 = vmatpush.msrb.mxu3 %v1587_v20  ;;  %v1685_v36 = vld [vmem:[%s2919_s4 + $0x170] sm:$0xff]  ;;  %v1690_v37 = vld [vmem:[%s2919_s4 + $0x178] sm:$0xff]  ;;  %v1697_v38 = vld [vmem:[%s2919_s4 + $0x140] sm:$0xff] }
   0xe   :  { %366 = vmatpush.msrb.mxu0 %v1594_v21  ;;  %386 = vmatpush.msrb.mxu1 %v1599_v22  ;;  %v1702_v39 = vld [vmem:[%s2919_s4 + $0x148] sm:$0xff]  ;;  %v1709_v40 = vld [vmem:[%s2919_s4 + $0x150] sm:$0xff]  ;;  %v1714_v41 = vld [vmem:[%s2919_s4 + $0x158] sm:$0xff] }
   0xf   :  { %406 = vmatpush.msrb.mxu2 %v1606_v23  ;;  %426 = vmatpush.msrb.mxu3 %v1611_v24  ;;  %v35_v42 = vld [vmem:[%s2918_s0 + $0x10] sm:$0xff]  ;;  %v1727_v43 = vld [vmem:[%s2919_s4 + $0x120] sm:$0xff]  ;;  %v1732_v44 = vld [vmem:[%s2919_s4 + $0x128] sm:$0xff] }
  0x10   :  { %367 = vmatpush.msrb.mxu0 %v1618_v25  ;;  %387 = vmatpush.msrb.mxu1 %v1623_v26  ;;  %v1740_v45 = vld [vmem:[%s2919_s4 + $0x130] sm:$0xff]  ;;  %v1745_v46 = vld [vmem:[%s2919_s4 + $0x138] sm:$0xff]  ;;  %v1752_v47 = vld [vmem:[%s2919_s4 + $0x100] sm:$0xff] }
  0x11   :  { %407 = vmatpush.msrb.mxu2 %v1630_v27  ;;  %427 = vmatpush.msrb.mxu3 %v1635_v28  ;;  %v1757_v48 = vld [vmem:[%s2919_s4 + $0x108] sm:$0xff]  ;;  %v1764_v49 = vld [vmem:[%s2919_s4 + $0x110] sm:$0xff]  ;;  %v1769_v50 = vld [vmem:[%s2919_s4 + $0x118] sm:$0xff] }
  0x12   :  { %1301 = vmatmul.msk.f32.gmra.mxu0 %vm67_vm0, %v34_v29  ;;  %1309 = vmatmul.msk.f32.gmra.mxu1 %vm67_vm0, %v34_v29  ;;  %v1776_v51 = vld [vmem:[%s2919_s4 + $0xe0] sm:$0xff]  ;;  %v1781_v52 = vld [vmem:[%s2919_s4 + $0xe8] sm:$0xff]  ;;  %v1788_v53 = vld [vmem:[%s2919_s4 + $0xf0] sm:$0xff] }
  0x13   :  { %1317 = vmatmul.msk.f32.gmra.mxu2 %vm67_vm0, %v34_v29  ;;  %1325 = vmatmul.msk.f32.gmra.mxu3 %vm67_vm0, %v34_v29  ;;  %v1793_v54 = vld [vmem:[%s2919_s4 + $0xf8] sm:$0xff]  ;;  %v1806_v56 = vld [vmem:[%s2919_s4 + $0xc0] sm:$0xff]  ;;  %v1811_v57 = vld [vmem:[%s2919_s4 + $0xc8] sm:$0xff] }
  0x14   :  { %368 = vmatpush.msrb.mxu0 %v1648_v30  ;;  %388 = vmatpush.msrb.mxu1 %v1653_v31  ;;  %v36_v55 = vld [vmem:[%s2918_s0 + $0x18] sm:$0xff]  ;;  %v1819_v58 = vld [vmem:[%s2919_s4 + $0xd0] sm:$0xff]  ;;  %v1831_v60 = vld [vmem:[%s2919_s4 + $0xa0] sm:$0xff] }
  0x15   :  { %408 = vmatpush.msrb.mxu2 %v1661_v32  ;;  %428 = vmatpush.msrb.mxu3 %v1666_v33  ;;  %v1824_v59 = vld [vmem:[%s2919_s4 + $0xd8] sm:$0xff]  ;;  %3015 = vst [vmem:[#allocation5_spill] sm:$0xff] %v1831_v60  ;;  %v1836_v61 = vld [vmem:[%s2919_s4 + $0xa8] sm:$0xff]  ;;  %v1843_v62 = vld [vmem:[%s2919_s4 + $0xb0] sm:$0xff] }
  0x16   :  { %369 = vmatpush.msrb.mxu0 %v1673_v34  ;;  %389 = vmatpush.msrb.mxu1 %v1678_v35  ;;  %3016 = vst [vmem:[#allocation6_spill] sm:$0xff] %v1836_v61  ;;  %v1848_v63 = vld [vmem:[%s2919_s4 + $0xb8] sm:$0xff]  ;;  %v1855_v0 = vld [vmem:[%s2919_s4 + $0x80] sm:$0xff]  ;;  %v1860_v1 = vld [vmem:[%s2919_s4 + $0x88] sm:$0xff] }
  0x17   :  { %409 = vmatpush.msrb.mxu2 %v1685_v36  ;;  %429 = vmatpush.msrb.mxu3 %v1690_v37  ;;  %3017 = vst [vmem:[#allocation7_spill] sm:$0xff] %v1843_v62  ;;  %v1867_v2 = vld [vmem:[%s2919_s4 + $0x90] sm:$0xff]  ;;  %v1872_v3 = vld [vmem:[%s2919_s4 + $0x98] sm:$0xff]  ;;  %v37_v4 = vld [vmem:[%s2918_s0 + $0x20] sm:$0xff] }
  0x18   :  { %370 = vmatpush.msrb.mxu0 %v1697_v38  ;;  %390 = vmatpush.msrb.mxu1 %v1702_v39  ;;  %3018 = vst [vmem:[#allocation8_spill] sm:$0xff] %v1848_v63  ;;  %v1885_v5 = vld [vmem:[%s2919_s4 + $0x60] sm:$0xff]  ;;  %v1890_v6 = vld [vmem:[%s2919_s4 + $0x68] sm:$0xff]  ;;  %v1898_v7 = vld [vmem:[%s2919_s4 + $0x70] sm:$0xff] }
  0x19   :  { %410 = vmatpush.msrb.mxu2 %v1709_v40  ;;  %430 = vmatpush.msrb.mxu3 %v1714_v41  ;;  %3019 = vst [vmem:[#allocation9_spill] sm:$0xff] %v1855_v0  ;;  %v1903_v8 = vld [vmem:[%s2919_s4 + $0x78] sm:$0xff]  ;;  %v1910_v9 = vld [vmem:[%s2919_s4 + $0x40] sm:$0xff]  ;;  %v1915_v10 = vld [vmem:[%s2919_s4 + $0x48] sm:$0xff] }
  0x1a   :  { %1302 = vmatmul.msk.f32.gmra.mxu0 %vm67_vm0, %v35_v42  ;;  %1310 = vmatmul.msk.f32.gmra.mxu1 %vm67_vm0, %v35_v42  ;;  %3020 = vst [vmem:[#allocation10_spill] sm:$0xff] %v1860_v1  ;;  %v1922_v11 = vld [vmem:[%s2919_s4 + $0x50] sm:$0xff]  ;;  %v1927_v12 = vld [vmem:[%s2919_s4 + $0x58] sm:$0xff]  ;;  %v1934_v13 = vld [vmem:[%s2919_s4 + $0x20] sm:$0xff] }
  0x1b   :  { %1318 = vmatmul.msk.f32.gmra.mxu2 %vm67_vm0, %v35_v42  ;;  %1326 = vmatmul.msk.f32.gmra.mxu3 %vm67_vm0, %v35_v42  ;;  %3021 = vst [vmem:[#allocation11_spill] sm:$0xff] %v1867_v2  ;;  %v1939_v14 = vld [vmem:[%s2919_s4 + $0x28] sm:$0xff]  ;;  %v1946_v15 = vld [vmem:[%s2919_s4 + $0x30] sm:$0xff]  ;;  %v1951_v16 = vld [vmem:[%s2919_s4 + $0x38] sm:$0xff] }
  0x1c   :  { %371 = vmatpush.msrb.mxu0 %v1727_v43  ;;  %391 = vmatpush.msrb.mxu1 %v1732_v44  ;;  %3022 = vst [vmem:[#allocation12_spill] sm:$0xff] %v1872_v3  ;;  %v38_v29 = vld [vmem:[%s2918_s0 + $0x28] sm:$0xff]  ;;  %v1964_v42 = vld [vmem:[%s2919_s4] sm:$0xff] }
  0x1d   :  { %411 = vmatpush.msrb.mxu2 %v1740_v45  ;;  %431 = vmatpush.msrb.mxu3 %v1745_v46  ;;  %3023 = vst [vmem:[#allocation13_spill] sm:$0xff] %v1885_v5 }
  0x1e   :  { %372 = vmatpush.msrb.mxu0 %v1752_v47  ;;  %392 = vmatpush.msrb.mxu1 %v1757_v48  ;;  %3024 = vst [vmem:[#allocation14_spill] sm:$0xff] %v1890_v6 }
  0x1f   :  { %412 = vmatpush.msrb.mxu2 %v1764_v49  ;;  %432 = vmatpush.msrb.mxu3 %v1769_v50  ;;  %3025 = vst [vmem:[#allocation15_spill] sm:$0xff] %v1898_v7 }
  0x20   :  { %373 = vmatpush.msrb.mxu0 %v1776_v51  ;;  %393 = vmatpush.msrb.mxu1 %v1781_v52  ;;  %3026 = vst [vmem:[#allocation16_spill] sm:$0xff] %v1903_v8 }
  0x21   :  { %413 = vmatpush.msrb.mxu2 %v1788_v53  ;;  %433 = vmatpush.msrb.mxu3 %v1793_v54  ;;  %3027 = vst [vmem:[#allocation17_spill] sm:$0xff] %v1910_v9 }
  0x22   :  { %1303 = vmatmul.msk.f32.gmra.mxu0 %vm67_vm0, %v36_v55  ;;  %1311 = vmatmul.msk.f32.gmra.mxu1 %vm67_vm0, %v36_v55  ;;  %3028 = vst [vmem:[#allocation18_spill] sm:$0xff] %v1915_v10 }
  0x23   :  { %1319 = vmatmul.msk.f32.gmra.mxu2 %vm67_vm0, %v36_v55  ;;  %1327 = vmatmul.msk.f32.gmra.mxu3 %vm67_vm0, %v36_v55  ;;  %3029 = vst [vmem:[#allocation19_spill] sm:$0xff] %v1922_v11  ;;  %v1969_v55 = vld [vmem:[%s2919_s4 + $0x8] sm:$0xff] }
  0x24   :  { %374 = vmatpush.msrb.mxu0 %v1806_v56  ;;  %394 = vmatpush.msrb.mxu1 %v1811_v57  ;;  %3030 = vst [vmem:[#allocation20_spill] sm:$0xff] %v1927_v12 }
  0x25   :  { %414 = vmatpush.msrb.mxu2 %v1819_v58  ;;  %434 = vmatpush.msrb.mxu3 %v1824_v59  ;;  %3031 = vst [vmem:[#allocation21_spill] sm:$0xff] %v1934_v13 }
  0x26   :  { %375 = vmatpush.msrb.mxu0 %v1831_v60  ;;  %395 = vmatpush.msrb.mxu1 %v1836_v61  ;;  %3032 = vst [vmem:[#allocation22_spill] sm:$0xff] %v1939_v14 }
  0x27   :  { %415 = vmatpush.msrb.mxu2 %v1843_v62  ;;  %435 = vmatpush.msrb.mxu3 %v1848_v63  ;;  %3033 = vst [vmem:[#allocation23_spill] sm:$0xff] %v1946_v15 }
  0x28   :  { %376 = vmatpush.msrb.mxu0 %v1855_v0  ;;  %396 = vmatpush.msrb.mxu1 %v1860_v1  ;;  %3034 = vst [vmem:[#allocation24_spill] sm:$0xff] %v1951_v16 }
  0x29   :  { %416 = vmatpush.msrb.mxu2 %v1867_v2  ;;  %436 = vmatpush.msrb.mxu3 %v1872_v3  ;;  %3035 = vst [vmem:[#allocation25_spill] sm:$0xff] %v1964_v42 }
  0x2a   :  { %1304 = vmatmul.msk.f32.gmra.mxu0 %vm67_vm0, %v37_v4  ;;  %1312 = vmatmul.msk.f32.gmra.mxu1 %vm67_vm0, %v37_v4  ;;  %3036 = vst [vmem:[#allocation26_spill] sm:$0xff] %v1969_v55 }
  0x2b   :  { %1320 = vmatmul.msk.f32.gmra.mxu2 %vm67_vm0, %v37_v4  ;;  %1328 = vmatmul.msk.f32.gmra.mxu3 %vm67_vm0, %v37_v4  ;;  %v1977_v4 = vld [vmem:[%s2919_s4 + $0x10] sm:$0xff] }
  0x2c   :  { %377 = vmatpush.msrb.mxu0 %v1885_v5  ;;  %397 = vmatpush.msrb.mxu1 %v1890_v6  ;;  %3037 = vst [vmem:[#allocation27_spill] sm:$0xff] %v1977_v4 }
  0x2d   :  { %417 = vmatpush.msrb.mxu2 %v1898_v7  ;;  %437 = vmatpush.msrb.mxu3 %v1903_v8 }
  0x2e   :  { %378 = vmatpush.msrb.mxu0 %v1910_v9  ;;  %398 = vmatpush.msrb.mxu1 %v1915_v10 }
  0x2f   :  { %418 = vmatpush.msrb.mxu2 %v1922_v11  ;;  %438 = vmatpush.msrb.mxu3 %v1927_v12 }
  0x30   :  { %379 = vmatpush.msrb.mxu0 %v1934_v13  ;;  %399 = vmatpush.msrb.mxu1 %v1939_v14 }
  0x31   :  { %419 = vmatpush.msrb.mxu2 %v1946_v15  ;;  %439 = vmatpush.msrb.mxu3 %v1951_v16  ;;  %v1982_v15 = vld [vmem:[%s2919_s4 + $0x18] sm:$0xff]  ;;  %v39_v16 = vld [vmem:[%s2918_s0 + $0x30] sm:$0xff] }
  0x32   :  { %1305 = vmatmul.msk.f32.gmra.mxu0 %vm67_vm0, %v38_v29  ;;  %1313 = vmatmul.msk.f32.gmra.mxu1 %vm67_vm0, %v38_v29  ;;  %3038 = vst [vmem:[#allocation28_spill] sm:$0xff] %v1982_v15 }
  0x33   :  { %1321 = vmatmul.msk.f32.gmra.mxu2 %vm67_vm0, %v38_v29  ;;  %1329 = vmatmul.msk.f32.gmra.mxu3 %vm67_vm0, %v38_v29  ;;  %v40_v29 = vld [vmem:[%s2918_s0 + $0x38] sm:$0xff] }
  0x34   :  { %380 = vmatpush.msrb.mxu0 %v1964_v42  ;;  %400 = vmatpush.msrb.mxu1 %v1969_v55 }
  0x35   :  { %420 = vmatpush.msrb.mxu2 %v1977_v4  ;;  %440 = vmatpush.msrb.mxu3 %v1982_v15 }
  0x36   :  { %480 = vmatpush.msra.mxu0 %v1570_v17  ;;  %500 = vmatpush.msra.mxu1 %v1575_v18 }
  0x37   :  { %520 = vmatpush.msra.mxu2 %v1582_v19  ;;  %540 = vmatpush.msra.mxu3 %v1587_v20 }
  0x38   :  { %481 = vmatpush.msra.mxu0 %v1594_v21  ;;  %501 = vmatpush.msra.mxu1 %v1599_v22 }
  0x39   :  { %521 = vmatpush.msra.mxu2 %v1606_v23  ;;  %541 = vmatpush.msra.mxu3 %v1611_v24 }
  0x3a   :  { %1306 = vmatmul.msk.f32.gmra.mxu0 %vm67_vm0, %v39_v16  ;;  %1314 = vmatmul.msk.f32.gmra.mxu1 %vm67_vm0, %v39_v16 }
  0x3b   :  { %1322 = vmatmul.msk.f32.gmra.mxu2 %vm67_vm0, %v39_v16  ;;  %1330 = vmatmul.msk.f32.gmra.mxu3 %vm67_vm0, %v39_v16  ;;  %v29_v16 = vld [vmem:[%s2920_s1] sm:$0xff] }
  0x3c   :  { %482 = vmatpush.msra.mxu0 %v1618_v25  ;;  %502 = vmatpush.msra.mxu1 %v1623_v26 }
  0x3d   :  { %522 = vmatpush.msra.mxu2 %v1630_v27  ;;  %542 = vmatpush.msra.mxu3 %v1635_v28 }
  0x3e   :  { %483 = vmatpush.msra.mxu0 %v1648_v30  ;;  %503 = vmatpush.msra.mxu1 %v1653_v31 }
  0x3f   :  { %523 = vmatpush.msra.mxu2 %v1661_v32  ;;  %543 = vmatpush.msra.mxu3 %v1666_v33 }
  0x40   :  { %484 = vmatpush.msra.mxu0 %v1673_v34  ;;  %504 = vmatpush.msra.mxu1 %v1678_v35 }
  0x41   :  { %524 = vmatpush.msra.mxu2 %v1685_v36  ;;  %544 = vmatpush.msra.mxu3 %v1690_v37 }
  0x42   :  { %1307 = vmatmul.msk.f32.gmra.mxu0 %vm67_vm0, %v40_v29  ;;  %1315 = vmatmul.msk.f32.gmra.mxu1 %vm67_vm0, %v40_v29 }
  0x43   :  { %1323 = vmatmul.msk.f32.gmra.mxu2 %vm67_vm0, %v40_v29  ;;  %1331 = vmatmul.msk.f32.gmra.mxu3 %vm67_vm0, %v40_v29  ;;  %v3039_v29 = vld [vmem:[#allocation23_spill] sm:$0xff] }
  0x44   :  { %485 = vmatpush.msra.mxu0 %v1697_v38  ;;  %505 = vmatpush.msra.mxu1 %v1702_v39 }
  0x45   :  { %525 = vmatpush.msra.mxu2 %v1709_v40  ;;  %545 = vmatpush.msra.mxu3 %v1714_v41 }
  0x46   :  { %486 = vmatpush.msra.mxu0 %v1727_v43  ;;  %506 = vmatpush.msra.mxu1 %v1732_v44 }
  0x47   :  { %526 = vmatpush.msra.mxu2 %v1740_v45  ;;  %546 = vmatpush.msra.mxu3 %v1745_v46 }
  0x48   :  { %487 = vmatpush.msra.mxu0 %v1752_v47  ;;  %507 = vmatpush.msra.mxu1 %v1757_v48 }
  0x49   :  { %527 = vmatpush.msra.mxu2 %v1764_v49  ;;  %547 = vmatpush.msra.mxu3 %v1769_v50 }
  0x4a   :  { %381 = vmatmul.f32.vlgmr.msrb.gmra.mxu0 %v29_v16  ;;  %401 = vmatmul.f32.vlgmr.msrb.gmra.mxu1 %v29_v16 }
  0x4b   :  { %421 = vmatmul.f32.vlgmr.msrb.gmra.mxu2 %v29_v16  ;;  %441 = vmatmul.f32.vlgmr.msrb.gmra.mxu3 %v29_v16  ;;  %v3040_v16 = vld [vmem:[#allocation24_spill] sm:$0xff] }
  0x4c   :  { %488 = vmatpush.msra.mxu0 %v1776_v51  ;;  %508 = vmatpush.msra.mxu1 %v1781_v52 }
  0x4d   :  { %528 = vmatpush.msra.mxu2 %v1788_v53  ;;  %548 = vmatpush.msra.mxu3 %v1793_v54 }
  0x4e   :  { %489 = vmatpush.msra.mxu0 %v1806_v56  ;;  %509 = vmatpush.msra.mxu1 %v1811_v57 }
  0x4f   :  { %529 = vmatpush.msra.mxu2 %v1819_v58  ;;  %549 = vmatpush.msra.mxu3 %v1824_v59 }
  0x50   :  { %490 = vmatpush.msra.mxu0 %v1831_v60  ;;  %510 = vmatpush.msra.mxu1 %v1836_v61 }
  0x51   :  { %530 = vmatpush.msra.mxu2 %v1843_v62  ;;  %550 = vmatpush.msra.mxu3 %v1848_v63 }
  0x52   :  { %491 = vmatpush.msra.mxu0 %v1855_v0  ;;  %511 = vmatpush.msra.mxu1 %v1860_v1 }
  0x53   :  { %531 = vmatpush.msra.mxu2 %v1867_v2  ;;  %551 = vmatpush.msra.mxu3 %v1872_v3 }
  0x54   :  { %492 = vmatpush.msra.mxu0 %v1885_v5  ;;  %512 = vmatpush.msra.mxu1 %v1890_v6 }
  0x55   :  { %532 = vmatpush.msra.mxu2 %v1898_v7  ;;  %552 = vmatpush.msra.mxu3 %v1903_v8 }
  0x56   :  { %493 = vmatpush.msra.mxu0 %v1910_v9  ;;  %513 = vmatpush.msra.mxu1 %v1915_v10 }
  0x57   :  { %533 = vmatpush.msra.mxu2 %v1922_v11  ;;  %553 = vmatpush.msra.mxu3 %v1927_v12 }
  0x58   :  { %494 = vmatpush.msra.mxu0 %v1934_v13  ;;  %514 = vmatpush.msra.mxu1 %v1939_v14 }
  0x59   :  { %534 = vmatpush.msra.mxu2 %v3039_v29  ;;  %554 = vmatpush.msra.mxu3 %v3040_v16 }
  0x5a   :  { %495 = vmatpush.msra.mxu0 %v1964_v42  ;;  %515 = vmatpush.msra.mxu1 %v1969_v55 }
  0x5b   :  { %535 = vmatpush.msra.mxu2 %v1977_v4  ;;  %555 = vmatpush.msra.mxu3 %v1982_v15 }
  0x5c   :  { %595 = vmatpush.msrb.mxu0 %v1570_v17  ;;  %615 = vmatpush.msrb.mxu1 %v1575_v18 }
  0x5d   :  { %635 = vmatpush.msrb.mxu2 %v1582_v19  ;;  %655 = vmatpush.msrb.mxu3 %v1587_v20 }
  0x5e   :  { %596 = vmatpush.msrb.mxu0 %v1594_v21  ;;  %616 = vmatpush.msrb.mxu1 %v1599_v22 }
  0x5f   :  { %636 = vmatpush.msrb.mxu2 %v1606_v23  ;;  %656 = vmatpush.msrb.mxu3 %v1611_v24 }
  0x60   :  { %597 = vmatpush.msrb.mxu0 %v1618_v25  ;;  %617 = vmatpush.msrb.mxu1 %v1623_v26 }
  0x61   :  { %637 = vmatpush.msrb.mxu2 %v1630_v27  ;;  %657 = vmatpush.msrb.mxu3 %v1635_v28 }
  0x62   :  { %598 = vmatpush.msrb.mxu0 %v1648_v30  ;;  %618 = vmatpush.msrb.mxu1 %v1653_v31 }
  0x63   :  { %638 = vmatpush.msrb.mxu2 %v1661_v32  ;;  %658 = vmatpush.msrb.mxu3 %v1666_v33 }
  0x64   :  { %599 = vmatpush.msrb.mxu0 %v1673_v34  ;;  %619 = vmatpush.msrb.mxu1 %v1678_v35 }
  0x65   :  { %639 = vmatpush.msrb.mxu2 %v1685_v36  ;;  %659 = vmatpush.msrb.mxu3 %v1690_v37 }
  0x66   :  { %600 = vmatpush.msrb.mxu0 %v1697_v38  ;;  %620 = vmatpush.msrb.mxu1 %v1702_v39 }
  0x67   :  { %640 = vmatpush.msrb.mxu2 %v1709_v40  ;;  %660 = vmatpush.msrb.mxu3 %v1714_v41 }
  0x68   :  { %601 = vmatpush.msrb.mxu0 %v1727_v43  ;;  %621 = vmatpush.msrb.mxu1 %v1732_v44 }
  0x69   :  { %641 = vmatpush.msrb.mxu2 %v1740_v45  ;;  %661 = vmatpush.msrb.mxu3 %v1745_v46 }
  0x6a   :  { %602 = vmatpush.msrb.mxu0 %v1752_v47  ;;  %622 = vmatpush.msrb.mxu1 %v1757_v48 }
  0x6b   :  { %642 = vmatpush.msrb.mxu2 %v1764_v49  ;;  %662 = vmatpush.msrb.mxu3 %v1769_v50 }
  0x6c   :  { %603 = vmatpush.msrb.mxu0 %v1776_v51  ;;  %623 = vmatpush.msrb.mxu1 %v1781_v52 }
  0x6d   :  { %643 = vmatpush.msrb.mxu2 %v1788_v53  ;;  %663 = vmatpush.msrb.mxu3 %v1793_v54 }
  0x6e   :  { %604 = vmatpush.msrb.mxu0 %v1806_v56  ;;  %624 = vmatpush.msrb.mxu1 %v1811_v57 }
  0x6f   :  { %644 = vmatpush.msrb.mxu2 %v1819_v58  ;;  %664 = vmatpush.msrb.mxu3 %v1824_v59 }
  0x70   :  { %605 = vmatpush.msrb.mxu0 %v1831_v60  ;;  %625 = vmatpush.msrb.mxu1 %v1836_v61 }
  0x71   :  { %645 = vmatpush.msrb.mxu2 %v1843_v62  ;;  %665 = vmatpush.msrb.mxu3 %v1848_v63 }
  0x72   :  { %606 = vmatpush.msrb.mxu0 %v1855_v0  ;;  %626 = vmatpush.msrb.mxu1 %v1860_v1 }
  0x73   :  { %646 = vmatpush.msrb.mxu2 %v1867_v2  ;;  %666 = vmatpush.msrb.mxu3 %v1872_v3 }
  0x74   :  { %607 = vmatpush.msrb.mxu0 %v1885_v5  ;;  %627 = vmatpush.msrb.mxu1 %v1890_v6 }
  0x75   :  { %647 = vmatpush.msrb.mxu2 %v1898_v7  ;;  %667 = vmatpush.msrb.mxu3 %v1903_v8 }
  0x76   :  { %608 = vmatpush.msrb.mxu0 %v1910_v9  ;;  %628 = vmatpush.msrb.mxu1 %v1915_v10 }
  0x77   :  { %648 = vmatpush.msrb.mxu2 %v1922_v11  ;;  %668 = vmatpush.msrb.mxu3 %v1927_v12 }
  0x78   :  { %609 = vmatpush.msrb.mxu0 %v1934_v13  ;;  %629 = vmatpush.msrb.mxu1 %v1939_v14  ;;  %v57_v13 = vld [vmem:[%s2921_s5] sm:$0xf] }
  0x79   :  { %649 = vmatpush.msrb.mxu2 %v3039_v29  ;;  %669 = vmatpush.msrb.mxu3 %v3040_v16  ;;  %v59_v12 = vperm.slane %v57_v13, 0  ;;  %v60_v14 = vperm.slane %v57_v13, 1 }
  0x7a   :  { %610 = vmatpush.msrb.mxu0 %v1964_v42  ;;  %630 = vmatpush.msrb.mxu1 %v1969_v55 }
  0x7b   :  { %650 = vmatpush.msrb.mxu2 %v1977_v4  ;;  %670 = vmatpush.msrb.mxu3 %v1982_v15  ;;  %v2146_v4 = vperm.slane %v57_v13, 2  ;;  %v2148_v15 = vperm.slane %v57_v13, 3 }
  0x87   :  { %v109_v10 = vpop.f32.mrf.mxu0  ;;  %v150_v11 = vpop.f32.mrf.mxu1 }
  0x8e   :  { %v2138_v9 = vpop.f32.mrf.mxu2  ;;  %v2140_v29 = vpop.f32.mrf.mxu3 }
  0x8f   :  { %v112_v16 = vpop.f32.mrf.mxu0  ;;  %v153_v42 = vpop.f32.mrf.mxu1 }
  0x90   :  { %v2142_v8 = vadd.f32 %v112_v16, %v59_v12  ;;  %v2144_v55 = vadd.f32 %v153_v42, %v60_v14 }
  0x92   :  { %3041 = vst [vmem:[#allocation29_spill] sm:$0xff] %v2142_v8 }
  0x93   :  { %3042 = vst [vmem:[#allocation30_spill] sm:$0xff] %v2144_v55 }
  0x96   :  { %v194_v7 = vpop.f32.mrf.mxu2  ;;  %v235_v6 = vpop.f32.mrf.mxu3 }
  0x97   :  { %v2151_v5 = vadd.f32 %v194_v7, %v2146_v4  ;;  %v2154_v3 = vadd.f32 %v235_v6, %v2148_v15  ;;  %v115_v2 = vpop.f32.mrf.mxu0  ;;  %v156_v1 = vpop.f32.mrf.mxu1 }
  0x98   :  { %v2156_v0 = vadd.f32 %v115_v2, %v59_v12  ;;  %v2158_v16 = vadd.f32 %v156_v1, %v60_v14 }
  0x99   :  { %3043 = vst [vmem:[#allocation31_spill] sm:$0xff] %v2151_v5 }
  0x9a   :  { %3044 = vst [vmem:[#allocation32_spill] sm:$0xff] %v2154_v3 }
  0x9b   :  { %3045 = vst [vmem:[#allocation33_spill] sm:$0xff] %v2156_v0 }
  0x9c   :  { %3046 = vst [vmem:[#allocation34_spill] sm:$0xff] %v2158_v16 }
  0x9e   :  { %v197_v42 = vpop.f32.mrf.mxu2  ;;  %v238_v55 = vpop.f32.mrf.mxu3 }
  0x9f   :  { %v2161_v8 = vadd.f32 %v197_v42, %v2146_v4  ;;  %v2164_v13 = vadd.f32 %v238_v55, %v2148_v15  ;;  %v118_v63 = vpop.f32.mrf.mxu0  ;;  %v159_v7 = vpop.f32.mrf.mxu1 }
  0xa0   :  { %v2166_v5 = vadd.f32 %v118_v63, %v59_v12  ;;  %v2168_v6 = vadd.f32 %v159_v7, %v60_v14 }
  0xa1   :  { %3047 = vst [vmem:[#allocation35_spill] sm:$0xff] %v2161_v8 }
  0xa2   :  { %3048 = vst [vmem:[#allocation36_spill] sm:$0xff] %v2164_v13 }
  0xa3   :  { %3049 = vst [vmem:[#allocation37_spill] sm:$0xff] %v2166_v5 }
  0xa4   :  { %3050 = vst [vmem:[#allocation38_spill] sm:$0xff] %v2168_v6 }
  0xa6   :  { %v200_v3 = vpop.f32.mrf.mxu2  ;;  %v241_v62 = vpop.f32.mrf.mxu3 }
  0xa7   :  { %v2171_v2 = vadd.f32 %v200_v3, %v2146_v4  ;;  %v2174_v1 = vadd.f32 %v241_v62, %v2148_v15  ;;  %v121_v16 = vpop.f32.mrf.mxu0  ;;  %v162_v42 = vpop.f32.mrf.mxu1 }
  0xa8   :  { %v2176_v8 = vadd.f32 %v121_v16, %v59_v12  ;;  %v2178_v55 = vadd.f32 %v162_v42, %v60_v14 }
  0xa9   :  { %3051 = vst [vmem:[#allocation39_spill] sm:$0xff] %v2171_v2 }
  0xaa   :  { %3052 = vst [vmem:[#allocation40_spill] sm:$0xff] %v2174_v1 }
  0xab   :  { %3053 = vst [vmem:[#allocation41_spill] sm:$0xff] %v2176_v8 }
  0xac   :  { %3054 = vst [vmem:[#allocation42_spill] sm:$0xff] %v2178_v55 }
  0xae   :  { %v203_v13 = vpop.f32.mrf.mxu2  ;;  %v244_v0 = vpop.f32.mrf.mxu3 }
  0xaf   :  { %v2181_v63 = vadd.f32 %v203_v13, %v2146_v4  ;;  %v2184_v7 = vadd.f32 %v244_v0, %v2148_v15  ;;  %v124_v6 = vpop.f32.mrf.mxu0  ;;  %v165_v3 = vpop.f32.mrf.mxu1 }
  0xb0   :  { %v2186_v2 = vadd.f32 %v124_v6, %v59_v12  ;;  %v2188_v62 = vadd.f32 %v165_v3, %v60_v14 }
  0xb1   :  { %3055 = vst [vmem:[#allocation43_spill] sm:$0xff] %v2181_v63 }
  0xb2   :  { %3056 = vst [vmem:[#allocation44_spill] sm:$0xff] %v2184_v7 }
  0xb3   :  { %3057 = vst [vmem:[#allocation45_spill] sm:$0xff] %v2186_v2  ;;  %v151_v2 = vadd.f32 %v150_v11, %v60_v14 }
  0xb4   :  { %3058 = vst [vmem:[#allocation46_spill] sm:$0xff] %v2188_v62 }
  0xb6   :  { %v206_v1 = vpop.f32.mrf.mxu2  ;;  %v247_v5 = vpop.f32.mrf.mxu3 }
  0xb7   :  { %v2191_v16 = vadd.f32 %v206_v1, %v2146_v4  ;;  %v2194_v42 = vadd.f32 %v247_v5, %v2148_v15  ;;  %v127_v55 = vpop.f32.mrf.mxu0  ;;  %v168_v13 = vpop.f32.mrf.mxu1 }
  0xb8   :  { %v2196_v63 = vadd.f32 %v127_v55, %v59_v12  ;;  %v2198_v0 = vadd.f32 %v168_v13, %v60_v14 }
  0xb9   :  { %3059 = vst [vmem:[#allocation47_spill] sm:$0xff] %v2191_v16 }
  0xba   :  { %3060 = vst [vmem:[#allocation48_spill] sm:$0xff] %v2194_v42  ;;  %v110_v42 = vadd.f32 %v109_v10, %v59_v12  ;;  %v233_v10 = vadd.f32 %v2140_v29, %v2148_v15 }
  0xbb   :  { %3061 = vst [vmem:[#allocation49_spill] sm:$0xff] %v2196_v63 }
  0xbc   :  { %3062 = vst [vmem:[#allocation50_spill] sm:$0xff] %v2198_v0 }
  0xbe   :  { %v209_v7 = vpop.f32.mrf.mxu2  ;;  %v250_v8 = vpop.f32.mrf.mxu3 }
  0xbf   :  { %v2201_v6 = vadd.f32 %v209_v7, %v2146_v4  ;;  %v2204_v3 = vadd.f32 %v250_v8, %v2148_v15  ;;  %v130_v62 = vpop.f32.mrf.mxu0  ;;  %v171_v1 = vpop.f32.mrf.mxu1 }
  0xc0   :  { %v2206_v16 = vadd.f32 %v130_v62, %v59_v12  ;;  %v2208_v5 = vadd.f32 %v171_v1, %v60_v14  ;;  %v192_v62 = vadd.f32 %v2138_v9, %v2146_v4 }
  0xc1   :  { %3063 = vst [vmem:[#allocation51_spill] sm:$0xff] %v2201_v6 }
  0xc2   :  { %3064 = vst [vmem:[#allocation52_spill] sm:$0xff] %v2204_v3 }
  0xc3   :  { %3065 = vst [vmem:[#allocation53_spill] sm:$0xff] %v2206_v16  ;;  %v3091_v16 = vld [vmem:[#allocation27_spill] sm:$0xff] }
  0xc4   :  { %3066 = vst [vmem:[#allocation54_spill] sm:$0xff] %v2208_v5  ;;  %v3090_v5 = vld [vmem:[#allocation26_spill] sm:$0xff] }
  0xc6   :  { %v212_v55 = vpop.f32.mrf.mxu2  ;;  %v253_v63 = vpop.f32.mrf.mxu3 }
  0xc7   :  { %v2211_v13 = vadd.f32 %v212_v55, %v2146_v4  ;;  %v2214_v0 = vadd.f32 %v253_v63, %v2148_v15  ;;  %v382_v7 = vpop.f32.mrf.mxu0  ;;  %v402_v6 = vpop.f32.mrf.mxu1 }
  0xc8   :  { %v445_v8 = vadd.f32 %v382_v7, %v110_v42  ;;  %v446_v3 = vadd.f32 %v402_v6, %v151_v2 }
  0xc9   :  { %3067 = vst [vmem:[#allocation55_spill] sm:$0xff] %v2211_v13  ;;  %v3089_v13 = vld [vmem:[#allocation25_spill] sm:$0xff] }
  0xca   :  { %3068 = vst [vmem:[#allocation56_spill] sm:$0xff] %v2214_v0  ;;  %v449_v61 = vmul.f32 0.5, %v445_v8  ;;  %v453_v60 = vmul.f32 0.5, %v446_v3 }
  0xcc   :  { %1332 = vtanh.f32 %v449_v61  ;;  %v31_v61 = vld [vmem:[%s2922_s2] sm:$0xff] }
  0xcd   :  { %1334 = vtanh.f32 %v453_v60 }
  0xce   :  { %v422_v11 = vpop.f32.mrf.mxu2  ;;  %v442_v12 = vpop.f32.mrf.mxu3 }
  0xcf   :  { %v447_v14 = vadd.f32 %v422_v11, %v192_v62  ;;  %v448_v1 = vadd.f32 %v442_v12, %v233_v10  ;;  %v3070_v11 = vld [vmem:[#allocation6_spill] sm:$0xff]  ;;  %v3071_v12 = vld [vmem:[#allocation7_spill] sm:$0xff] }
  0xd1   :  { %1336 = vtanh.f32 %v447_v14  ;;  %v458_v63 = vmul.f32 0.5, %v448_v1  ;;  %v3072_v14 = vld [vmem:[#allocation8_spill] sm:$0xff]  ;;  %v3073_v1 = vld [vmem:[#allocation9_spill] sm:$0xff] }
  0xd2   :  { %v1333_v55 = vpop.eup %1332 }
  0xd3   :  { %v1335_v0 = vpop.eup %1334  ;;  %v451_v42 = vadd.f32 1.0, %v1333_v55  ;;  %1338 = vtanh.f32 %v458_v63  ;;  %v3074_v63 = vld [vmem:[#allocation10_spill] sm:$0xff]  ;;  %v3075_v55 = vld [vmem:[#allocation11_spill] sm:$0xff] }
  0xd4   :  { %v455_v2 = vadd.f32 1.0, %v1335_v0  ;;  %v3069_v0 = vld [vmem:[#allocation5_spill] sm:$0xff] }
  0xd5   :  { %v452_v6 = vmul.f32 0.5, %v451_v42  ;;  %v3076_v42 = vld [vmem:[#allocation12_spill] sm:$0xff] }
  0xd6   :  { %v456_v9 = vmul.f32 0.5, %v455_v2  ;;  %v3077_v2 = vld [vmem:[#allocation13_spill] sm:$0xff] }
  0xd7   :  { %v1337_v4 = vpop.eup %1336 }
  0xd8   :  { %v462_v15 = vmul.f32 %v456_v9, %v31_v61  ;;  %v463_v60 = vmul.f32 %v1337_v4, %v452_v6  ;;  %v3078_v6 = vld [vmem:[#allocation14_spill] sm:$0xff]  ;;  %v3079_v61 = vld [vmem:[#allocation15_spill] sm:$0xff]  ;;  %v3080_v9 = vld [vmem:[#allocation16_spill] sm:$0xff] }
  0xd9   :  { %v1339_v29 = vpop.eup %1338  ;;  %v3081_v4 = vld [vmem:[#allocation17_spill] sm:$0xff] }
  0xda   :  { %v2223_v3 = vadd.f32 %v463_v60, %v462_v15  ;;  %v460_v7 = vadd.f32 1.0, %v1339_v29  ;;  %v3082_v15 = vld [vmem:[#allocation18_spill] sm:$0xff]  ;;  %v3083_v60 = vld [vmem:[#allocation19_spill] sm:$0xff]  ;;  %v3084_v29 = vld [vmem:[#allocation20_spill] sm:$0xff] }
  0xdc   :  { %1340 = vtanh.f32 %v2223_v3  ;;  %v461_v8 = vmul.f32 0.5, %v460_v7  ;;  %v3085_v7 = vld [vmem:[#allocation21_spill] sm:$0xff] }
  0xe2   :  { %v1341_v62 = vpop.eup %1340 }
  0xe3   :  { %v466_v10 = vmul.f32 %v1341_v62, %v461_v8  ;;  %v3086_v8 = vld [vmem:[#allocation22_spill] sm:$0xff]  ;;  %v3087_v62 = vld [vmem:[#allocation23_spill] sm:$0xff] }
  0xe5   :  { %496 = vmatmul.f32.vlgmr.msra.gmra.mxu0 %v466_v10  ;;  %516 = vmatmul.f32.vlgmr.msra.gmra.mxu1 %v466_v10 }
  0xe6   :  { %536 = vmatmul.f32.vlgmr.msra.gmra.mxu2 %v466_v10  ;;  %556 = vmatmul.f32.vlgmr.msra.gmra.mxu3 %v466_v10  ;;  %v3088_v10 = vld [vmem:[#allocation24_spill] sm:$0xff] }
  0xe7   :  { %710 = vmatpush.msra.mxu0 %v1570_v17  ;;  %730 = vmatpush.msra.mxu1 %v1575_v18 }
  0xe8   :  { %750 = vmatpush.msra.mxu2 %v1582_v19  ;;  %770 = vmatpush.msra.mxu3 %v1587_v20 }
  0xe9   :  { %711 = vmatpush.msra.mxu0 %v1594_v21  ;;  %731 = vmatpush.msra.mxu1 %v1599_v22 }
  0xea   :  { %751 = vmatpush.msra.mxu2 %v1606_v23  ;;  %771 = vmatpush.msra.mxu3 %v1611_v24 }
  0xeb   :  { %712 = vmatpush.msra.mxu0 %v1618_v25  ;;  %732 = vmatpush.msra.mxu1 %v1623_v26 }
  0xec   :  { %752 = vmatpush.msra.mxu2 %v1630_v27  ;;  %772 = vmatpush.msra.mxu3 %v1635_v28 }
  0xed   :  { %713 = vmatpush.msra.mxu0 %v1648_v30  ;;  %733 = vmatpush.msra.mxu1 %v1653_v31 }
  0xee   :  { %753 = vmatpush.msra.mxu2 %v1661_v32  ;;  %773 = vmatpush.msra.mxu3 %v1666_v33 }
  0xef   :  { %714 = vmatpush.msra.mxu0 %v1673_v34  ;;  %734 = vmatpush.msra.mxu1 %v1678_v35 }
  0xf0   :  { %754 = vmatpush.msra.mxu2 %v1685_v36  ;;  %774 = vmatpush.msra.mxu3 %v1690_v37 }
  0xf1   :  { %715 = vmatpush.msra.mxu0 %v1697_v38  ;;  %735 = vmatpush.msra.mxu1 %v1702_v39 }
  0xf2   :  { %755 = vmatpush.msra.mxu2 %v1709_v40  ;;  %775 = vmatpush.msra.mxu3 %v1714_v41 }
  0xf3   :  { %716 = vmatpush.msra.mxu0 %v1727_v43  ;;  %736 = vmatpush.msra.mxu1 %v1732_v44 }
  0xf4   :  { %756 = vmatpush.msra.mxu2 %v1740_v45  ;;  %776 = vmatpush.msra.mxu3 %v1745_v46 }
  0xf5   :  { %717 = vmatpush.msra.mxu0 %v1752_v47  ;;  %737 = vmatpush.msra.mxu1 %v1757_v48 }
  0xf6   :  { %757 = vmatpush.msra.mxu2 %v1764_v49  ;;  %777 = vmatpush.msra.mxu3 %v1769_v50 }
  0xf7   :  { %718 = vmatpush.msra.mxu0 %v1776_v51  ;;  %738 = vmatpush.msra.mxu1 %v1781_v52 }
  0xf8   :  { %758 = vmatpush.msra.mxu2 %v1788_v53  ;;  %778 = vmatpush.msra.mxu3 %v1793_v54 }
  0xf9   :  { %719 = vmatpush.msra.mxu0 %v1806_v56  ;;  %739 = vmatpush.msra.mxu1 %v1811_v57 }
  0xfa   :  { %759 = vmatpush.msra.mxu2 %v1819_v58  ;;  %779 = vmatpush.msra.mxu3 %v1824_v59 }
  0xfb   :  { %720 = vmatpush.msra.mxu0 %v3069_v0  ;;  %740 = vmatpush.msra.mxu1 %v3070_v11 }
  0xfc   :  { %760 = vmatpush.msra.mxu2 %v3071_v12  ;;  %780 = vmatpush.msra.mxu3 %v3072_v14 }
  0xfd   :  { %721 = vmatpush.msra.mxu0 %v3073_v1  ;;  %741 = vmatpush.msra.mxu1 %v3074_v63 }
  0xfe   :  { %761 = vmatpush.msra.mxu2 %v3075_v55  ;;  %781 = vmatpush.msra.mxu3 %v3076_v42  ;;  %v3096_v42 = vld [vmem:[#allocation32_spill] sm:$0xff] }
  0xff   :  { %722 = vmatpush.msra.mxu0 %v3077_v2  ;;  %742 = vmatpush.msra.mxu1 %v3078_v6  ;;  %v3095_v2 = vld [vmem:[#allocation31_spill] sm:$0xff] }
 0x100   :  { %762 = vmatpush.msra.mxu2 %v3079_v61  ;;  %782 = vmatpush.msra.mxu3 %v3080_v9  ;;  %v3093_v9 = vld [vmem:[#allocation29_spill] sm:$0xff]  ;;  %v3094_v61 = vld [vmem:[#allocation30_spill] sm:$0xff] }
 0x101   :  { %723 = vmatpush.msra.mxu0 %v3081_v4  ;;  %743 = vmatpush.msra.mxu1 %v3082_v15  ;;  %v3092_v4 = vld [vmem:[#allocation28_spill] sm:$0xff] }
 0x102   :  { %763 = vmatpush.msra.mxu2 %v3083_v60  ;;  %783 = vmatpush.msra.mxu3 %v3084_v29 }
 0x103   :  { %724 = vmatpush.msra.mxu0 %v3085_v7  ;;  %744 = vmatpush.msra.mxu1 %v3086_v8 }
 0x104   :  { %764 = vmatpush.msra.mxu2 %v3087_v62  ;;  %784 = vmatpush.msra.mxu3 %v3088_v10 }
 0x105   :  { %725 = vmatpush.msra.mxu0 %v3089_v13  ;;  %745 = vmatpush.msra.mxu1 %v3090_v5 }
 0x106   :  { %765 = vmatpush.msra.mxu2 %v3091_v16  ;;  %785 = vmatpush.msra.mxu3 %v3092_v4 }
 0x162   :  { %v497_v15 = vpop.f32.mrf.mxu0  ;;  %v517_v60 = vpop.f32.mrf.mxu1 }
 0x163   :  { %v560_v29 = vadd.f32 %v497_v15, %v3093_v9  ;;  %v561_v7 = vadd.f32 %v517_v60, %v3094_v61 }
 0x165   :  { %v564_v6 = vmul.f32 0.5, %v560_v29  ;;  %v568_v8 = vmul.f32 0.5, %v561_v7 }
 0x167   :  { %1342 = vtanh.f32 %v564_v6 }
 0x168   :  { %1344 = vtanh.f32 %v568_v8  ;;  %v2373_v8 = vld [vmem:[%s2919_s4 + $0x1e0] sm:$0xff] }
 0x169   :  { %v537_v62 = vpop.f32.mrf.mxu2  ;;  %v557_v10 = vpop.f32.mrf.mxu3 }
 0x16a   :  { %v562_v13 = vadd.f32 %v537_v62, %v3095_v2  ;;  %v563_v5 = vadd.f32 %v557_v10, %v3096_v42  ;;  %v2379_v62 = vld [vmem:[%s2919_s4 + $0x1e8] sm:$0xff]  ;;  %v2385_v10 = vld [vmem:[%s2919_s4 + $0x1f0] sm:$0xff] }
 0x16c   :  { %1346 = vtanh.f32 %v562_v13  ;;  %v573_v16 = vmul.f32 0.5, %v563_v5 }
 0x16d   :  { %v1343_v55 = vpop.eup %1342 }
 0x16e   :  { %v1345_v4 = vpop.eup %1344  ;;  %v566_v63 = vadd.f32 1.0, %v1343_v55  ;;  %1348 = vtanh.f32 %v573_v16 }
 0x16f   :  { %v570_v1 = vadd.f32 1.0, %v1345_v4 }
 0x170   :  { %v567_v9 = vmul.f32 0.5, %v566_v63 }
 0x171   :  { %v571_v15 = vmul.f32 0.5, %v570_v1 }
 0x172   :  { %v1347_v61 = vpop.eup %1346 }
 0x173   :  { %v577_v60 = vmul.f32 %v571_v15, %v2223_v3  ;;  %v578_v6 = vmul.f32 %v1347_v61, %v567_v9  ;;  %v2391_v9 = vld [vmem:[%s2919_s4 + $0x1f8] sm:$0xff]  ;;  %v2397_v15 = vld [vmem:[%s2919_s4 + $0x1c0] sm:$0xff]  ;;  %v2403_v61 = vld [vmem:[%s2919_s4 + $0x1c8] sm:$0xff] }
 0x174   :  { %v1349_v29 = vpop.eup %1348 }
 0x175   :  { %v2295_v7 = vadd.f32 %v578_v6, %v577_v60  ;;  %v575_v2 = vadd.f32 1.0, %v1349_v29  ;;  %v2409_v60 = vld [vmem:[%s2919_s4 + $0x1d0] sm:$0xff]  ;;  %v2415_v6 = vld [vmem:[%s2919_s4 + $0x1d8] sm:$0xff]  ;;  %v2421_v29 = vld [vmem:[%s2919_s4 + $0x1a0] sm:$0xff] }
 0x177   :  { %1350 = vtanh.f32 %v2295_v7  ;;  %v576_v42 = vmul.f32 0.5, %v575_v2  ;;  %v2433_v2 = vld [vmem:[%s2919_s4 + $0x1b0] sm:$0xff] }
 0x17d   :  { %v1351_v13 = vpop.eup %1350 }
 0x17e   :  { %v581_v5 = vmul.f32 %v1351_v13, %v576_v42  ;;  %v2439_v42 = vld [vmem:[%s2919_s4 + $0x1b8] sm:$0xff]  ;;  %v2445_v13 = vld [vmem:[%s2919_s4 + $0x180] sm:$0xff] }
 0x180   :  { %611 = vmatmul.f32.vlgmr.msrb.gmra.mxu0 %v581_v5  ;;  %631 = vmatmul.f32.vlgmr.msrb.gmra.mxu1 %v581_v5 }
 0x181   :  { %651 = vmatmul.f32.vlgmr.msrb.gmra.mxu2 %v581_v5  ;;  %671 = vmatmul.f32.vlgmr.msrb.gmra.mxu3 %v581_v5  ;;  %v2451_v5 = vld [vmem:[%s2919_s4 + $0x188] sm:$0xff] }
 0x182   :  { %825 = vmatpush.msrb.mxu0 %v1570_v17  ;;  %845 = vmatpush.msrb.mxu1 %v1575_v18  ;;  %v3097_v17 = vld [vmem:[#allocation9_spill] sm:$0xff]  ;;  %v3098_v18 = vld [vmem:[#allocation10_spill] sm:$0xff] }
 0x183   :  { %865 = vmatpush.msrb.mxu2 %v1582_v19  ;;  %885 = vmatpush.msrb.mxu3 %v1587_v20  ;;  %v3099_v19 = vld [vmem:[#allocation11_spill] sm:$0xff]  ;;  %v3100_v20 = vld [vmem:[#allocation12_spill] sm:$0xff] }
 0x184   :  { %826 = vmatpush.msrb.mxu0 %v1594_v21  ;;  %846 = vmatpush.msrb.mxu1 %v1599_v22  ;;  %v3101_v21 = vld [vmem:[#allocation13_spill] sm:$0xff]  ;;  %v3102_v22 = vld [vmem:[#allocation14_spill] sm:$0xff] }
 0x185   :  { %866 = vmatpush.msrb.mxu2 %v1606_v23  ;;  %886 = vmatpush.msrb.mxu3 %v1611_v24  ;;  %v3103_v23 = vld [vmem:[#allocation15_spill] sm:$0xff]  ;;  %v3104_v24 = vld [vmem:[#allocation16_spill] sm:$0xff] }
 0x186   :  { %827 = vmatpush.msrb.mxu0 %v1618_v25  ;;  %847 = vmatpush.msrb.mxu1 %v1623_v26  ;;  %v3105_v25 = vld [vmem:[#allocation17_spill] sm:$0xff]  ;;  %v3106_v26 = vld [vmem:[#allocation18_spill] sm:$0xff] }
 0x187   :  { %867 = vmatpush.msrb.mxu2 %v1630_v27  ;;  %887 = vmatpush.msrb.mxu3 %v1635_v28  ;;  %v3107_v27 = vld [vmem:[#allocation19_spill] sm:$0xff]  ;;  %v3108_v28 = vld [vmem:[#allocation20_spill] sm:$0xff] }
 0x188   :  { %828 = vmatpush.msrb.mxu0 %v1648_v30  ;;  %848 = vmatpush.msrb.mxu1 %v1653_v31  ;;  %v3109_v30 = vld [vmem:[#allocation21_spill] sm:$0xff]  ;;  %v3110_v31 = vld [vmem:[#allocation22_spill] sm:$0xff] }
 0x189   :  { %868 = vmatpush.msrb.mxu2 %v1661_v32  ;;  %888 = vmatpush.msrb.mxu3 %v1666_v33  ;;  %v3111_v32 = vld [vmem:[#allocation23_spill] sm:$0xff]  ;;  %v3112_v33 = vld [vmem:[#allocation24_spill] sm:$0xff] }
 0x18a   :  { %829 = vmatpush.msrb.mxu0 %v1673_v34  ;;  %849 = vmatpush.msrb.mxu1 %v1678_v35  ;;  %v3113_v34 = vld [vmem:[#allocation25_spill] sm:$0xff]  ;;  %v3114_v35 = vld [vmem:[#allocation26_spill] sm:$0xff] }
 0x18b   :  { %869 = vmatpush.msrb.mxu2 %v1685_v36  ;;  %889 = vmatpush.msrb.mxu3 %v1690_v37  ;;  %v3115_v36 = vld [vmem:[#allocation27_spill] sm:$0xff]  ;;  %v3116_v37 = vld [vmem:[#allocation28_spill] sm:$0xff] }
 0x18c   :  { %830 = vmatpush.msrb.mxu0 %v1697_v38  ;;  %850 = vmatpush.msrb.mxu1 %v1702_v39 }
 0x18d   :  { %870 = vmatpush.msrb.mxu2 %v1709_v40  ;;  %890 = vmatpush.msrb.mxu3 %v1714_v41  ;;  %v3117_v40 = vld [vmem:[#allocation33_spill] sm:$0xff] }
 0x18e   :  { %831 = vmatpush.msrb.mxu0 %v1727_v43  ;;  %851 = vmatpush.msrb.mxu1 %v1732_v44  ;;  %v3118_v43 = vld [vmem:[#allocation34_spill] sm:$0xff] }
 0x18f   :  { %871 = vmatpush.msrb.mxu2 %v1740_v45  ;;  %891 = vmatpush.msrb.mxu3 %v1745_v46 }
 0x190   :  { %832 = vmatpush.msrb.mxu0 %v1752_v47  ;;  %852 = vmatpush.msrb.mxu1 %v1757_v48 }
 0x191   :  { %872 = vmatpush.msrb.mxu2 %v1764_v49  ;;  %892 = vmatpush.msrb.mxu3 %v1769_v50  ;;  %v3119_v49 = vld [vmem:[#allocation35_spill] sm:$0xff] }
 0x192   :  { %833 = vmatpush.msrb.mxu0 %v1776_v51  ;;  %853 = vmatpush.msrb.mxu1 %v1781_v52  ;;  %v3120_v51 = vld [vmem:[#allocation36_spill] sm:$0xff] }
 0x193   :  { %873 = vmatpush.msrb.mxu2 %v1788_v53  ;;  %893 = vmatpush.msrb.mxu3 %v1793_v54 }
 0x194   :  { %834 = vmatpush.msrb.mxu0 %v1806_v56  ;;  %854 = vmatpush.msrb.mxu1 %v1811_v57 }
 0x195   :  { %874 = vmatpush.msrb.mxu2 %v1819_v58  ;;  %894 = vmatpush.msrb.mxu3 %v1824_v59 }
 0x196   :  { %835 = vmatpush.msrb.mxu0 %v3069_v0  ;;  %855 = vmatpush.msrb.mxu1 %v3070_v11 }
 0x197   :  { %875 = vmatpush.msrb.mxu2 %v3071_v12  ;;  %895 = vmatpush.msrb.mxu3 %v3072_v14 }
 0x198   :  { %836 = vmatpush.msrb.mxu0 %v3097_v17  ;;  %856 = vmatpush.msrb.mxu1 %v3098_v18  ;;  %v2457_v17 = vld [vmem:[%s2919_s4 + $0x190] sm:$0xff]  ;;  %v2463_v18 = vld [vmem:[%s2919_s4 + $0x198] sm:$0xff] }
 0x199   :  { %876 = vmatpush.msrb.mxu2 %v3099_v19  ;;  %896 = vmatpush.msrb.mxu3 %v3100_v20  ;;  %v2469_v19 = vld [vmem:[%s2919_s4 + $0x160] sm:$0xff]  ;;  %v2475_v20 = vld [vmem:[%s2919_s4 + $0x168] sm:$0xff] }
 0x19a   :  { %837 = vmatpush.msrb.mxu0 %v3101_v21  ;;  %857 = vmatpush.msrb.mxu1 %v3102_v22  ;;  %v2481_v21 = vld [vmem:[%s2919_s4 + $0x170] sm:$0xff]  ;;  %v2487_v22 = vld [vmem:[%s2919_s4 + $0x178] sm:$0xff] }
 0x19b   :  { %877 = vmatpush.msrb.mxu2 %v3103_v23  ;;  %897 = vmatpush.msrb.mxu3 %v3104_v24  ;;  %v2493_v23 = vld [vmem:[%s2919_s4 + $0x140] sm:$0xff]  ;;  %v2499_v24 = vld [vmem:[%s2919_s4 + $0x148] sm:$0xff] }
 0x19c   :  { %838 = vmatpush.msrb.mxu0 %v3105_v25  ;;  %858 = vmatpush.msrb.mxu1 %v3106_v26  ;;  %v2505_v25 = vld [vmem:[%s2919_s4 + $0x150] sm:$0xff]  ;;  %v2511_v26 = vld [vmem:[%s2919_s4 + $0x158] sm:$0xff] }
 0x19d   :  { %878 = vmatpush.msrb.mxu2 %v3107_v27  ;;  %898 = vmatpush.msrb.mxu3 %v3108_v28  ;;  %v2517_v27 = vld [vmem:[%s2919_s4 + $0x120] sm:$0xff]  ;;  %v2523_v28 = vld [vmem:[%s2919_s4 + $0x128] sm:$0xff] }
 0x19e   :  { %839 = vmatpush.msrb.mxu0 %v3109_v30  ;;  %859 = vmatpush.msrb.mxu1 %v3110_v31  ;;  %v2529_v30 = vld [vmem:[%s2919_s4 + $0x130] sm:$0xff]  ;;  %v2535_v31 = vld [vmem:[%s2919_s4 + $0x138] sm:$0xff] }
 0x19f   :  { %879 = vmatpush.msrb.mxu2 %v3111_v32  ;;  %899 = vmatpush.msrb.mxu3 %v3112_v33  ;;  %v2541_v32 = vld [vmem:[%s2919_s4 + $0x100] sm:$0xff]  ;;  %v2547_v33 = vld [vmem:[%s2919_s4 + $0x108] sm:$0xff] }
 0x1a0   :  { %840 = vmatpush.msrb.mxu0 %v3113_v34  ;;  %860 = vmatpush.msrb.mxu1 %v3114_v35  ;;  %v2553_v34 = vld [vmem:[%s2919_s4 + $0x110] sm:$0xff]  ;;  %v2559_v35 = vld [vmem:[%s2919_s4 + $0x118] sm:$0xff] }
 0x1a1   :  { %880 = vmatpush.msrb.mxu2 %v3115_v36  ;;  %900 = vmatpush.msrb.mxu3 %v3116_v37  ;;  %v2565_v36 = vld [vmem:[%s2919_s4 + $0xe0] sm:$0xff]  ;;  %v2571_v37 = vld [vmem:[%s2919_s4 + $0xe8] sm:$0xff] }
 0x1fd   :  { %v612_v38 = vpop.f32.mrf.mxu0  ;;  %v632_v39 = vpop.f32.mrf.mxu1 }
 0x1fe   :  { %v675_v41 = vadd.f32 %v612_v38, %v3117_v40  ;;  %v676_v44 = vadd.f32 %v632_v39, %v3118_v43  ;;  %v2577_v38 = vld [vmem:[%s2919_s4 + $0xf0] sm:$0xff]  ;;  %v2583_v39 = vld [vmem:[%s2919_s4 + $0xf8] sm:$0xff]  ;;  %v2589_v40 = vld [vmem:[%s2919_s4 + $0xc0] sm:$0xff] }
 0x1ff   :  { %v2601_v43 = vld [vmem:[%s2919_s4 + $0xd0] sm:$0xff] }
 0x200   :  { %v679_v45 = vmul.f32 0.5, %v675_v41  ;;  %v683_v46 = vmul.f32 0.5, %v676_v44  ;;  %v2595_v41 = vld [vmem:[%s2919_s4 + $0xc8] sm:$0xff]  ;;  %v2607_v44 = vld [vmem:[%s2919_s4 + $0xd8] sm:$0xff] }
 0x202   :  { %1352 = vtanh.f32 %v679_v45  ;;  %v2613_v45 = vld [vmem:[%s2919_s4 + $0xa0] sm:$0xff] }
 0x203   :  { %1354 = vtanh.f32 %v683_v46  ;;  %v2619_v46 = vld [vmem:[%s2919_s4 + $0xa8] sm:$0xff] }
 0x204   :  { %v652_v47 = vpop.f32.mrf.mxu2  ;;  %v672_v48 = vpop.f32.mrf.mxu3 }
 0x205   :  { %v677_v50 = vadd.f32 %v652_v47, %v3119_v49  ;;  %v678_v52 = vadd.f32 %v672_v48, %v3120_v51  ;;  %v2625_v47 = vld [vmem:[%s2919_s4 + $0xb0] sm:$0xff]  ;;  %v2631_v48 = vld [vmem:[%s2919_s4 + $0xb8] sm:$0xff]  ;;  %v2637_v49 = vld [vmem:[%s2919_s4 + $0x80] sm:$0xff] }
 0x206   :  { %3121 = vst [vmem:[#allocation5_spill] sm:$0xff] %v2637_v49  ;;  %v2649_v51 = vld [vmem:[%s2919_s4 + $0x90] sm:$0xff] }
 0x207   :  { %1356 = vtanh.f32 %v677_v50  ;;  %v688_v53 = vmul.f32 0.5, %v678_v52  ;;  %v2643_v50 = vld [vmem:[%s2919_s4 + $0x88] sm:$0xff]  ;;  %3123 = vst [vmem:[#allocation7_spill] sm:$0xff] %v2649_v51  ;;  %v2655_v52 = vld [vmem:[%s2919_s4 + $0x98] sm:$0xff] }
 0x208   :  { %v1353_v54 = vpop.eup %1352  ;;  %3122 = vst [vmem:[#allocation6_spill] sm:$0xff] %v2643_v50 }
 0x209   :  { %v1355_v56 = vpop.eup %1354  ;;  %v681_v57 = vadd.f32 1.0, %v1353_v54  ;;  %1358 = vtanh.f32 %v688_v53  ;;  %3124 = vst [vmem:[#allocation8_spill] sm:$0xff] %v2655_v52  ;;  %v2661_v53 = vld [vmem:[%s2919_s4 + $0x60] sm:$0xff]  ;;  %v2667_v54 = vld [vmem:[%s2919_s4 + $0x68] sm:$0xff] }
 0x20a   :  { %v685_v58 = vadd.f32 1.0, %v1355_v56  ;;  %3125 = vst [vmem:[#allocation29_spill] sm:$0xff] %v2661_v53  ;;  %v2673_v56 = vld [vmem:[%s2919_s4 + $0x70] sm:$0xff] }
 0x20b   :  { %v682_v59 = vmul.f32 0.5, %v681_v57  ;;  %3126 = vst [vmem:[#allocation30_spill] sm:$0xff] %v2667_v54  ;;  %v2679_v57 = vld [vmem:[%s2919_s4 + $0x78] sm:$0xff] }
 0x20c   :  { %v686_v16 = vmul.f32 0.5, %v685_v58  ;;  %3127 = vst [vmem:[#allocation31_spill] sm:$0xff] %v2673_v56  ;;  %v2685_v58 = vld [vmem:[%s2919_s4 + $0x40] sm:$0xff] }
 0x20d   :  { %v1357_v3 = vpop.eup %1356  ;;  %3128 = vst [vmem:[#allocation32_spill] sm:$0xff] %v2679_v57 }
 0x20e   :  { %v692_v0 = vmul.f32 %v686_v16, %v2295_v7  ;;  %v693_v11 = vmul.f32 %v1357_v3, %v682_v59  ;;  %v2427_v7 = vld [vmem:[%s2919_s4 + $0x1a8] sm:$0xff]  ;;  %3129 = vst [vmem:[#allocation9_spill] sm:$0xff] %v2685_v58  ;;  %v2697_v16 = vld [vmem:[%s2919_s4 + $0x50] sm:$0xff]  ;;  %v2703_v3 = vld [vmem:[%s2919_s4 + $0x58] sm:$0xff] }
 0x20f   :  { %v1359_v12 = vpop.eup %1358  ;;  %v2691_v59 = vld [vmem:[%s2919_s4 + $0x48] sm:$0xff]  ;;  %3131 = vst [vmem:[#allocation11_spill] sm:$0xff] %v2697_v16 }
 0x210   :  { %v2367_v14 = vadd.f32 %v693_v11, %v692_v0  ;;  %v690_v1 = vadd.f32 1.0, %v1359_v12  ;;  %3130 = vst [vmem:[#allocation10_spill] sm:$0xff] %v2691_v59  ;;  %v2709_v0 = vld [vmem:[%s2919_s4 + $0x20] sm:$0xff]  ;;  %v2715_v11 = vld [vmem:[%s2919_s4 + $0x28] sm:$0xff]  ;;  %v2721_v12 = vld [vmem:[%s2919_s4 + $0x30] sm:$0xff] }
 0x211   :  { %3132 = vst [vmem:[#allocation12_spill] sm:$0xff] %v2703_v3 }
 0x212   :  { %1360 = vtanh.f32 %v2367_v14  ;;  %v691_v63 = vmul.f32 0.5, %v690_v1  ;;  %3133 = vst [vmem:[#allocation13_spill] sm:$0xff] %v2709_v0  ;;  %v2727_v1 = vld [vmem:[%s2919_s4 + $0x38] sm:$0xff] }
 0x213   :  { %3134 = vst [vmem:[#allocation14_spill] sm:$0xff] %v2715_v11 }
 0x214   :  { %3135 = vst [vmem:[#allocation15_spill] sm:$0xff] %v2721_v12 }
 0x215   :  { %3136 = vst [vmem:[#allocation16_spill] sm:$0xff] %v2727_v1 }
 0x218   :  { %v1361_v55 = vpop.eup %1360 }
 0x219   :  { %v696_v4 = vmul.f32 %v1361_v55, %v691_v63  ;;  %v2733_v63 = vld [vmem:[%s2919_s4] sm:$0xff]  ;;  %v2739_v55 = vld [vmem:[%s2919_s4 + $0x8] sm:$0xff] }
 0x21a   :  { %3137 = vst [vmem:[#allocation17_spill] sm:$0xff] %v2733_v63 }
 0x21b   :  { %726 = vmatmul.f32.vlgmr.msra.gmra.mxu0 %v696_v4  ;;  %746 = vmatmul.f32.vlgmr.msra.gmra.mxu1 %v696_v4  ;;  %3138 = vst [vmem:[#allocation18_spill] sm:$0xff] %v2739_v55 }
 0x21c   :  { %766 = vmatmul.f32.vlgmr.msra.gmra.mxu2 %v696_v4  ;;  %786 = vmatmul.f32.vlgmr.msra.gmra.mxu3 %v696_v4  ;;  %v2745_v4 = vld [vmem:[%s2919_s4 + $0x10] sm:$0xff] }
 0x21d   :  { %940 = vmatpush.msra.mxu0 %v2373_v8  ;;  %960 = vmatpush.msra.mxu1 %v2379_v62  ;;  %3139 = vst [vmem:[#allocation19_spill] sm:$0xff] %v2745_v4 }
 0x21e   :  { %980 = vmatpush.msra.mxu2 %v2385_v10  ;;  %1000 = vmatpush.msra.mxu3 %v2391_v9 }
 0x21f   :  { %941 = vmatpush.msra.mxu0 %v2397_v15  ;;  %961 = vmatpush.msra.mxu1 %v2403_v61 }
 0x220   :  { %981 = vmatpush.msra.mxu2 %v2409_v60  ;;  %1001 = vmatpush.msra.mxu3 %v2415_v6 }
 0x221   :  { %942 = vmatpush.msra.mxu0 %v2421_v29  ;;  %962 = vmatpush.msra.mxu1 %v2427_v7 }
 0x222   :  { %982 = vmatpush.msra.mxu2 %v2433_v2  ;;  %1002 = vmatpush.msra.mxu3 %v2439_v42 }
 0x223   :  { %943 = vmatpush.msra.mxu0 %v2445_v13  ;;  %963 = vmatpush.msra.mxu1 %v2451_v5 }
 0x224   :  { %983 = vmatpush.msra.mxu2 %v2457_v17  ;;  %1003 = vmatpush.msra.mxu3 %v2463_v18 }
 0x225   :  { %944 = vmatpush.msra.mxu0 %v2469_v19  ;;  %964 = vmatpush.msra.mxu1 %v2475_v20 }
 0x226   :  { %984 = vmatpush.msra.mxu2 %v2481_v21  ;;  %1004 = vmatpush.msra.mxu3 %v2487_v22 }
 0x227   :  { %945 = vmatpush.msra.mxu0 %v2493_v23  ;;  %965 = vmatpush.msra.mxu1 %v2499_v24 }
 0x228   :  { %985 = vmatpush.msra.mxu2 %v2505_v25  ;;  %1005 = vmatpush.msra.mxu3 %v2511_v26 }
 0x229   :  { %946 = vmatpush.msra.mxu0 %v2517_v27  ;;  %966 = vmatpush.msra.mxu1 %v2523_v28 }
 0x22a   :  { %986 = vmatpush.msra.mxu2 %v2529_v30  ;;  %1006 = vmatpush.msra.mxu3 %v2535_v31 }
 0x22b   :  { %947 = vmatpush.msra.mxu0 %v2541_v32  ;;  %967 = vmatpush.msra.mxu1 %v2547_v33 }
 0x22c   :  { %987 = vmatpush.msra.mxu2 %v2553_v34  ;;  %1007 = vmatpush.msra.mxu3 %v2559_v35 }
 0x22d   :  { %948 = vmatpush.msra.mxu0 %v2565_v36  ;;  %968 = vmatpush.msra.mxu1 %v2571_v37 }
 0x22e   :  { %988 = vmatpush.msra.mxu2 %v2577_v38  ;;  %1008 = vmatpush.msra.mxu3 %v2583_v39 }
 0x22f   :  { %949 = vmatpush.msra.mxu0 %v2589_v40  ;;  %969 = vmatpush.msra.mxu1 %v2595_v41 }
 0x230   :  { %989 = vmatpush.msra.mxu2 %v2601_v43  ;;  %1009 = vmatpush.msra.mxu3 %v2607_v44 }
 0x231   :  { %950 = vmatpush.msra.mxu0 %v2613_v45  ;;  %970 = vmatpush.msra.mxu1 %v2619_v46 }
 0x232   :  { %990 = vmatpush.msra.mxu2 %v2625_v47  ;;  %1010 = vmatpush.msra.mxu3 %v2631_v48 }
 0x233   :  { %951 = vmatpush.msra.mxu0 %v2637_v49  ;;  %971 = vmatpush.msra.mxu1 %v2643_v50 }
 0x234   :  { %991 = vmatpush.msra.mxu2 %v2649_v51  ;;  %1011 = vmatpush.msra.mxu3 %v2655_v52 }
 0x235   :  { %952 = vmatpush.msra.mxu0 %v2661_v53  ;;  %972 = vmatpush.msra.mxu1 %v2667_v54  ;;  %v3144_v54 = vld [vmem:[#allocation40_spill] sm:$0xff] }
 0x236   :  { %992 = vmatpush.msra.mxu2 %v2673_v56  ;;  %1012 = vmatpush.msra.mxu3 %v2679_v57 }
 0x237   :  { %953 = vmatpush.msra.mxu0 %v2685_v58  ;;  %973 = vmatpush.msra.mxu1 %v2691_v59 }
 0x238   :  { %993 = vmatpush.msra.mxu2 %v2697_v16  ;;  %1013 = vmatpush.msra.mxu3 %v2703_v3  ;;  %v3142_v3 = vld [vmem:[#allocation38_spill] sm:$0xff] }
 0x239   :  { %954 = vmatpush.msra.mxu0 %v2709_v0  ;;  %974 = vmatpush.msra.mxu1 %v2715_v11  ;;  %v3141_v11 = vld [vmem:[#allocation37_spill] sm:$0xff] }
 0x23a   :  { %994 = vmatpush.msra.mxu2 %v2721_v12  ;;  %1014 = vmatpush.msra.mxu3 %v2727_v1  ;;  %v2751_v1 = vld [vmem:[%s2919_s4 + $0x18] sm:$0xff] }
 0x23b   :  { %955 = vmatpush.msra.mxu0 %v2733_v63  ;;  %975 = vmatpush.msra.mxu1 %v2739_v55  ;;  %3140 = vst [vmem:[#allocation20_spill] sm:$0xff] %v2751_v1 }
 0x23c   :  { %995 = vmatpush.msra.mxu2 %v2745_v4  ;;  %1015 = vmatpush.msra.mxu3 %v2751_v1  ;;  %v3143_v4 = vld [vmem:[#allocation39_spill] sm:$0xff] }
 0x298   :  { %v727_v63 = vpop.f32.mrf.mxu0  ;;  %v747_v12 = vpop.f32.mrf.mxu1 }
 0x299   :  { %v790_v0 = vadd.f32 %v727_v63, %v3141_v11  ;;  %v791_v55 = vadd.f32 %v747_v12, %v3142_v3 }
 0x29b   :  { %v794_v16 = vmul.f32 0.5, %v790_v0  ;;  %v798_v59 = vmul.f32 0.5, %v791_v55  ;;  %v3152_v55 = vld [vmem:[#allocation32_spill] sm:$0xff] }
 0x29d   :  { %1362 = vtanh.f32 %v794_v16 }
 0x29e   :  { %1364 = vtanh.f32 %v798_v59 }
 0x29f   :  { %v767_v58 = vpop.f32.mrf.mxu2  ;;  %v787_v57 = vpop.f32.mrf.mxu3 }
 0x2a0   :  { %v792_v56 = vadd.f32 %v767_v58, %v3143_v4  ;;  %v793_v53 = vadd.f32 %v787_v57, %v3144_v54  ;;  %v3150_v57 = vld [vmem:[#allocation30_spill] sm:$0xff]  ;;  %v3153_v4 = vld [vmem:[#allocation9_spill] sm:$0xff] }
 0x2a2   :  { %1366 = vtanh.f32 %v792_v56  ;;  %v803_v52 = vmul.f32 0.5, %v793_v53 }
 0x2a3   :  { %v1363_v51 = vpop.eup %1362 }
 0x2a4   :  { %v1365_v1 = vpop.eup %1364  ;;  %v796_v50 = vadd.f32 1.0, %v1363_v51  ;;  %1368 = vtanh.f32 %v803_v52  ;;  %v3148_v51 = vld [vmem:[#allocation8_spill] sm:$0xff]  ;;  %v3149_v52 = vld [vmem:[#allocation29_spill] sm:$0xff] }
 0x2a5   :  { %v800_v49 = vadd.f32 1.0, %v1365_v1  ;;  %v3151_v1 = vld [vmem:[#allocation31_spill] sm:$0xff] }
 0x2a6   :  { %v797_v11 = vmul.f32 0.5, %v796_v50  ;;  %v3147_v50 = vld [vmem:[#allocation7_spill] sm:$0xff] }
 0x2a7   :  { %v801_v63 = vmul.f32 0.5, %v800_v49  ;;  %v3146_v49 = vld [vmem:[#allocation6_spill] sm:$0xff] }
 0x2a8   :  { %v1367_v3 = vpop.eup %1366 }
 0x2a9   :  { %v807_v0 = vmul.f32 %v801_v63, %v2367_v14  ;;  %v808_v16 = vmul.f32 %v1367_v3, %v797_v11  ;;  %v3145_v14 = vld [vmem:[#allocation5_spill] sm:$0xff]  ;;  %v3154_v11 = vld [vmem:[#allocation10_spill] sm:$0xff]  ;;  %v3155_v63 = vld [vmem:[#allocation11_spill] sm:$0xff] }
 0x2aa   :  { %v1369_v59 = vpop.eup %1368  ;;  %v3156_v3 = vld [vmem:[#allocation12_spill] sm:$0xff] }
 0x2ab   :  { %v2759_v12 = vadd.f32 %v808_v16, %v807_v0  ;;  %v805_v58 = vadd.f32 1.0, %v1369_v59  ;;  %v3157_v0 = vld [vmem:[#allocation13_spill] sm:$0xff]  ;;  %v3158_v16 = vld [vmem:[#allocation14_spill] sm:$0xff]  ;;  %v3159_v59 = vld [vmem:[#allocation15_spill] sm:$0xff] }
 0x2ad   :  { %1370 = vtanh.f32 %v2759_v12  ;;  %v806_v54 = vmul.f32 0.5, %v805_v58  ;;  %v3160_v58 = vld [vmem:[#allocation16_spill] sm:$0xff] }
 0x2b3   :  { %v1371_v56 = vpop.eup %1370 }
 0x2b4   :  { %v811_v53 = vmul.f32 %v1371_v56, %v806_v54  ;;  %v3161_v54 = vld [vmem:[#allocation17_spill] sm:$0xff]  ;;  %v3162_v56 = vld [vmem:[#allocation18_spill] sm:$0xff] }
 0x2b6   :  { %841 = vmatmul.f32.vlgmr.msrb.gmra.mxu0 %v811_v53  ;;  %861 = vmatmul.f32.vlgmr.msrb.gmra.mxu1 %v811_v53 }
 0x2b7   :  { %881 = vmatmul.f32.vlgmr.msrb.gmra.mxu2 %v811_v53  ;;  %901 = vmatmul.f32.vlgmr.msrb.gmra.mxu3 %v811_v53  ;;  %v3163_v53 = vld [vmem:[#allocation19_spill] sm:$0xff] }
 0x2b8   :  { %1055 = vmatpush.msrb.mxu0 %v2373_v8  ;;  %1075 = vmatpush.msrb.mxu1 %v2379_v62 }
 0x2b9   :  { %1095 = vmatpush.msrb.mxu2 %v2385_v10  ;;  %1115 = vmatpush.msrb.mxu3 %v2391_v9 }
 0x2ba   :  { %1056 = vmatpush.msrb.mxu0 %v2397_v15  ;;  %1076 = vmatpush.msrb.mxu1 %v2403_v61 }
 0x2bb   :  { %1096 = vmatpush.msrb.mxu2 %v2409_v60  ;;  %1116 = vmatpush.msrb.mxu3 %v2415_v6 }
 0x2bc   :  { %1057 = vmatpush.msrb.mxu0 %v2421_v29  ;;  %1077 = vmatpush.msrb.mxu1 %v2427_v7 }
 0x2bd   :  { %1097 = vmatpush.msrb.mxu2 %v2433_v2  ;;  %1117 = vmatpush.msrb.mxu3 %v2439_v42 }
 0x2be   :  { %1058 = vmatpush.msrb.mxu0 %v2445_v13  ;;  %1078 = vmatpush.msrb.mxu1 %v2451_v5 }
 0x2bf   :  { %1098 = vmatpush.msrb.mxu2 %v2457_v17  ;;  %1118 = vmatpush.msrb.mxu3 %v2463_v18 }
 0x2c0   :  { %1059 = vmatpush.msrb.mxu0 %v2469_v19  ;;  %1079 = vmatpush.msrb.mxu1 %v2475_v20 }
 0x2c1   :  { %1099 = vmatpush.msrb.mxu2 %v2481_v21  ;;  %1119 = vmatpush.msrb.mxu3 %v2487_v22 }
 0x2c2   :  { %1060 = vmatpush.msrb.mxu0 %v2493_v23  ;;  %1080 = vmatpush.msrb.mxu1 %v2499_v24 }
 0x2c3   :  { %1100 = vmatpush.msrb.mxu2 %v2505_v25  ;;  %1120 = vmatpush.msrb.mxu3 %v2511_v26 }
 0x2c4   :  { %1061 = vmatpush.msrb.mxu0 %v2517_v27  ;;  %1081 = vmatpush.msrb.mxu1 %v2523_v28 }
 0x2c5   :  { %1101 = vmatpush.msrb.mxu2 %v2529_v30  ;;  %1121 = vmatpush.msrb.mxu3 %v2535_v31 }
 0x2c6   :  { %1062 = vmatpush.msrb.mxu0 %v2541_v32  ;;  %1082 = vmatpush.msrb.mxu1 %v2547_v33 }
 0x2c7   :  { %1102 = vmatpush.msrb.mxu2 %v2553_v34  ;;  %1122 = vmatpush.msrb.mxu3 %v2559_v35 }
 0x2c8   :  { %1063 = vmatpush.msrb.mxu0 %v2565_v36  ;;  %1083 = vmatpush.msrb.mxu1 %v2571_v37 }
 0x2c9   :  { %1103 = vmatpush.msrb.mxu2 %v2577_v38  ;;  %1123 = vmatpush.msrb.mxu3 %v2583_v39 }
 0x2ca   :  { %1064 = vmatpush.msrb.mxu0 %v2589_v40  ;;  %1084 = vmatpush.msrb.mxu1 %v2595_v41 }
 0x2cb   :  { %1104 = vmatpush.msrb.mxu2 %v2601_v43  ;;  %1124 = vmatpush.msrb.mxu3 %v2607_v44 }
 0x2cc   :  { %1065 = vmatpush.msrb.mxu0 %v2613_v45  ;;  %1085 = vmatpush.msrb.mxu1 %v2619_v46 }
 0x2cd   :  { %1105 = vmatpush.msrb.mxu2 %v2625_v47  ;;  %1125 = vmatpush.msrb.mxu3 %v2631_v48 }
 0x2ce   :  { %1066 = vmatpush.msrb.mxu0 %v3145_v14  ;;  %1086 = vmatpush.msrb.mxu1 %v3146_v49 }
 0x2cf   :  { %1106 = vmatpush.msrb.mxu2 %v3147_v50  ;;  %1126 = vmatpush.msrb.mxu3 %v3148_v51  ;;  %v3168_v51 = vld [vmem:[#allocation44_spill] sm:$0xff] }
 0x2d0   :  { %1067 = vmatpush.msrb.mxu0 %v3149_v52  ;;  %1087 = vmatpush.msrb.mxu1 %v3150_v57  ;;  %v3167_v52 = vld [vmem:[#allocation43_spill] sm:$0xff] }
 0x2d1   :  { %1107 = vmatpush.msrb.mxu2 %v3151_v1  ;;  %1127 = vmatpush.msrb.mxu3 %v3152_v55  ;;  %v3165_v55 = vld [vmem:[#allocation41_spill] sm:$0xff]  ;;  %v3166_v1 = vld [vmem:[#allocation42_spill] sm:$0xff] }
 0x2d2   :  { %1068 = vmatpush.msrb.mxu0 %v3153_v4  ;;  %1088 = vmatpush.msrb.mxu1 %v3154_v11  ;;  %v3164_v4 = vld [vmem:[#allocation20_spill] sm:$0xff] }
 0x2d3   :  { %1108 = vmatpush.msrb.mxu2 %v3155_v63  ;;  %1128 = vmatpush.msrb.mxu3 %v3156_v3 }
 0x2d4   :  { %1069 = vmatpush.msrb.mxu0 %v3157_v0  ;;  %1089 = vmatpush.msrb.mxu1 %v3158_v16 }
 0x2d5   :  { %1109 = vmatpush.msrb.mxu2 %v3159_v59  ;;  %1129 = vmatpush.msrb.mxu3 %v3160_v58 }
 0x2d6   :  { %1070 = vmatpush.msrb.mxu0 %v3161_v54  ;;  %1090 = vmatpush.msrb.mxu1 %v3162_v56 }
 0x2d7   :  { %1110 = vmatpush.msrb.mxu2 %v3163_v53  ;;  %1130 = vmatpush.msrb.mxu3 %v3164_v4 }
 0x333   :  { %v842_v11 = vpop.f32.mrf.mxu0  ;;  %v862_v63 = vpop.f32.mrf.mxu1 }
 0x334   :  { %v905_v3 = vadd.f32 %v842_v11, %v3165_v55  ;;  %v906_v0 = vadd.f32 %v862_v63, %v3166_v1 }
 0x336   :  { %v909_v57 = vmul.f32 0.5, %v905_v3  ;;  %v913_v16 = vmul.f32 0.5, %v906_v0 }
 0x338   :  { %1372 = vtanh.f32 %v909_v57 }
 0x339   :  { %1374 = vtanh.f32 %v913_v16 }
 0x33a   :  { %v882_v59 = vpop.f32.mrf.mxu2  ;;  %v902_v58 = vpop.f32.mrf.mxu3 }
 0x33b   :  { %v907_v54 = vadd.f32 %v882_v59, %v3167_v52  ;;  %v908_v56 = vadd.f32 %v902_v58, %v3168_v51 }
 0x33d   :  { %1376 = vtanh.f32 %v907_v54  ;;  %v918_v53 = vmul.f32 0.5, %v908_v56 }
 0x33e   :  { %v1373_v50 = vpop.eup %1372 }
 0x33f   :  { %v1375_v4 = vpop.eup %1374  ;;  %v911_v49 = vadd.f32 1.0, %v1373_v50  ;;  %1378 = vtanh.f32 %v918_v53  ;;  %v3193_v53 = vld [vmem:[#allocation49_spill] sm:$0xff] }
 0x340   :  { %v915_v14 = vadd.f32 1.0, %v1375_v4 }
 0x341   :  { %v912_v55 = vmul.f32 0.5, %v911_v49 }
 0x342   :  { %v916_v11 = vmul.f32 0.5, %v915_v14 }
 0x343   :  { %v1377_v1 = vpop.eup %1376 }
 0x344   :  { %v922_v63 = vmul.f32 %v916_v11, %v2759_v12  ;;  %v923_v57 = vmul.f32 %v1377_v1, %v912_v55  ;;  %v3194_v11 = vld [vmem:[#allocation50_spill] sm:$0xff] }
 0x345   :  { %v1379_v3 = vpop.eup %1378 }
 0x346   :  { %v2831_v0 = vadd.f32 %v923_v57, %v922_v63  ;;  %v920_v52 = vadd.f32 1.0, %v1379_v3 }
 0x348   :  { %1380 = vtanh.f32 %v2831_v0  ;;  %v921_v51 = vmul.f32 0.5, %v920_v52  ;;  %v3195_v52 = vld [vmem:[#allocation51_spill] sm:$0xff] }
 0x34e   :  { %v1381_v16 = vpop.eup %1380 }
 0x34f   :  { %v926_v59 = vmul.f32 %v1381_v16, %v921_v51  ;;  %v3196_v16 = vld [vmem:[#allocation52_spill] sm:$0xff] }
 0x351   :  { %956 = vmatmul.f32.vlgmr.msra.gmra.mxu0 %v926_v59  ;;  %976 = vmatmul.f32.vlgmr.msra.gmra.mxu1 %v926_v59 }
 0x352   :  { %996 = vmatmul.f32.vlgmr.msra.gmra.mxu2 %v926_v59  ;;  %1016 = vmatmul.f32.vlgmr.msra.gmra.mxu3 %v926_v59 }
 0x353   :  { %1170 = vmatpush.msra.mxu0 %v2373_v8  ;;  %1190 = vmatpush.msra.mxu1 %v2379_v62  ;;  %v3169_v8 = vld [vmem:[#allocation5_spill] sm:$0xff]  ;;  %v3170_v62 = vld [vmem:[#allocation6_spill] sm:$0xff] }
 0x354   :  { %1210 = vmatpush.msra.mxu2 %v2385_v10  ;;  %1230 = vmatpush.msra.mxu3 %v2391_v9  ;;  %v3171_v10 = vld [vmem:[#allocation7_spill] sm:$0xff]  ;;  %v3172_v9 = vld [vmem:[#allocation8_spill] sm:$0xff] }
 0x355   :  { %1171 = vmatpush.msra.mxu0 %v2397_v15  ;;  %1191 = vmatpush.msra.mxu1 %v2403_v61  ;;  %v3173_v15 = vld [vmem:[#allocation29_spill] sm:$0xff]  ;;  %v3174_v61 = vld [vmem:[#allocation30_spill] sm:$0xff] }
 0x356   :  { %1211 = vmatpush.msra.mxu2 %v2409_v60  ;;  %1231 = vmatpush.msra.mxu3 %v2415_v6  ;;  %v3175_v60 = vld [vmem:[#allocation31_spill] sm:$0xff]  ;;  %v3176_v6 = vld [vmem:[#allocation32_spill] sm:$0xff] }
 0x357   :  { %1172 = vmatpush.msra.mxu0 %v2421_v29  ;;  %1192 = vmatpush.msra.mxu1 %v2427_v7  ;;  %v3177_v29 = vld [vmem:[#allocation9_spill] sm:$0xff]  ;;  %v3178_v7 = vld [vmem:[#allocation10_spill] sm:$0xff] }
 0x358   :  { %1212 = vmatpush.msra.mxu2 %v2433_v2  ;;  %1232 = vmatpush.msra.mxu3 %v2439_v42  ;;  %v3179_v2 = vld [vmem:[#allocation11_spill] sm:$0xff]  ;;  %v3180_v42 = vld [vmem:[#allocation12_spill] sm:$0xff] }
 0x359   :  { %1173 = vmatpush.msra.mxu0 %v2445_v13  ;;  %1193 = vmatpush.msra.mxu1 %v2451_v5  ;;  %v3181_v13 = vld [vmem:[#allocation13_spill] sm:$0xff]  ;;  %v3182_v5 = vld [vmem:[#allocation14_spill] sm:$0xff] }
 0x35a   :  { %1213 = vmatpush.msra.mxu2 %v2457_v17  ;;  %1233 = vmatpush.msra.mxu3 %v2463_v18  ;;  %v3183_v17 = vld [vmem:[#allocation15_spill] sm:$0xff]  ;;  %v3184_v18 = vld [vmem:[#allocation16_spill] sm:$0xff] }
 0x35b   :  { %1174 = vmatpush.msra.mxu0 %v2469_v19  ;;  %1194 = vmatpush.msra.mxu1 %v2475_v20  ;;  %v3185_v19 = vld [vmem:[#allocation17_spill] sm:$0xff]  ;;  %v3186_v20 = vld [vmem:[#allocation18_spill] sm:$0xff] }
 0x35c   :  { %1214 = vmatpush.msra.mxu2 %v2481_v21  ;;  %1234 = vmatpush.msra.mxu3 %v2487_v22  ;;  %v3187_v21 = vld [vmem:[#allocation19_spill] sm:$0xff]  ;;  %v3188_v22 = vld [vmem:[#allocation20_spill] sm:$0xff] }
 0x35d   :  { %1175 = vmatpush.msra.mxu0 %v2493_v23  ;;  %1195 = vmatpush.msra.mxu1 %v2499_v24 }
 0x35e   :  { %1215 = vmatpush.msra.mxu2 %v2505_v25  ;;  %1235 = vmatpush.msra.mxu3 %v2511_v26  ;;  %v3189_v25 = vld [vmem:[#allocation45_spill] sm:$0xff] }
 0x35f   :  { %1176 = vmatpush.msra.mxu0 %v2517_v27  ;;  %1196 = vmatpush.msra.mxu1 %v2523_v28  ;;  %v3190_v27 = vld [vmem:[#allocation46_spill] sm:$0xff] }
 0x360   :  { %1216 = vmatpush.msra.mxu2 %v2529_v30  ;;  %1236 = vmatpush.msra.mxu3 %v2535_v31 }
 0x361   :  { %1177 = vmatpush.msra.mxu0 %v2541_v32  ;;  %1197 = vmatpush.msra.mxu1 %v2547_v33 }
 0x362   :  { %1217 = vmatpush.msra.mxu2 %v2553_v34  ;;  %1237 = vmatpush.msra.mxu3 %v2559_v35  ;;  %v3191_v34 = vld [vmem:[#allocation47_spill] sm:$0xff] }
 0x363   :  { %1178 = vmatpush.msra.mxu0 %v2565_v36  ;;  %1198 = vmatpush.msra.mxu1 %v2571_v37  ;;  %v3192_v36 = vld [vmem:[#allocation48_spill] sm:$0xff] }
 0x364   :  { %1218 = vmatpush.msra.mxu2 %v2577_v38  ;;  %1238 = vmatpush.msra.mxu3 %v2583_v39 }
 0x365   :  { %1179 = vmatpush.msra.mxu0 %v2589_v40  ;;  %1199 = vmatpush.msra.mxu1 %v2595_v41 }
 0x366   :  { %1219 = vmatpush.msra.mxu2 %v2601_v43  ;;  %1239 = vmatpush.msra.mxu3 %v2607_v44 }
 0x367   :  { %1180 = vmatpush.msra.mxu0 %v2613_v45  ;;  %1200 = vmatpush.msra.mxu1 %v2619_v46 }
 0x368   :  { %1220 = vmatpush.msra.mxu2 %v2625_v47  ;;  %1240 = vmatpush.msra.mxu3 %v2631_v48 }
 0x369   :  { %1181 = vmatpush.msra.mxu0 %v3169_v8  ;;  %1201 = vmatpush.msra.mxu1 %v3170_v62 }
 0x36a   :  { %1221 = vmatpush.msra.mxu2 %v3171_v10  ;;  %1241 = vmatpush.msra.mxu3 %v3172_v9 }
 0x36b   :  { %1182 = vmatpush.msra.mxu0 %v3173_v15  ;;  %1202 = vmatpush.msra.mxu1 %v3174_v61 }
 0x36c   :  { %1222 = vmatpush.msra.mxu2 %v3175_v60  ;;  %1242 = vmatpush.msra.mxu3 %v3176_v6 }
 0x36d   :  { %1183 = vmatpush.msra.mxu0 %v3177_v29  ;;  %1203 = vmatpush.msra.mxu1 %v3178_v7 }
 0x36e   :  { %1223 = vmatpush.msra.mxu2 %v3179_v2  ;;  %1243 = vmatpush.msra.mxu3 %v3180_v42 }
 0x36f   :  { %1184 = vmatpush.msra.mxu0 %v3181_v13  ;;  %1204 = vmatpush.msra.mxu1 %v3182_v5 }
 0x370   :  { %1224 = vmatpush.msra.mxu2 %v3183_v17  ;;  %1244 = vmatpush.msra.mxu3 %v3184_v18 }
 0x371   :  { %1185 = vmatpush.msra.mxu0 %v3185_v19  ;;  %1205 = vmatpush.msra.mxu1 %v3186_v20 }
 0x372   :  { %1225 = vmatpush.msra.mxu2 %v3187_v21  ;;  %1245 = vmatpush.msra.mxu3 %v3188_v22  ;;  %v3197_v21 = vld [vmem:[#allocation53_spill] sm:$0xff] }
 0x3ce   :  { %v957_v23 = vpop.f32.mrf.mxu0  ;;  %v977_v24 = vpop.f32.mrf.mxu1 }
 0x3cf   :  { %v1020_v26 = vadd.f32 %v957_v23, %v3189_v25  ;;  %v1021_v28 = vadd.f32 %v977_v24, %v3190_v27  ;;  %v3198_v23 = vld [vmem:[#allocation54_spill] sm:$0xff] }
 0x3d1   :  { %v1024_v30 = vmul.f32 0.5, %v1020_v26  ;;  %v1028_v31 = vmul.f32 0.5, %v1021_v28 }
 0x3d3   :  { %1382 = vtanh.f32 %v1024_v30  ;;  %v3199_v30 = vld [vmem:[#allocation55_spill] sm:$0xff] }
 0x3d4   :  { %1384 = vtanh.f32 %v1028_v31 }
 0x3d5   :  { %v997_v32 = vpop.f32.mrf.mxu2  ;;  %v1017_v33 = vpop.f32.mrf.mxu3 }
 0x3d6   :  { %v1022_v35 = vadd.f32 %v997_v32, %v3191_v34  ;;  %v1023_v37 = vadd.f32 %v1017_v33, %v3192_v36  ;;  %v3200_v32 = vld [vmem:[#allocation56_spill] sm:$0xff] }
 0x3d8   :  { %1386 = vtanh.f32 %v1022_v35  ;;  %v1033_v38 = vmul.f32 0.5, %v1023_v37 }
 0x3d9   :  { %v1383_v39 = vpop.eup %1382 }
 0x3da   :  { %v1385_v40 = vpop.eup %1384  ;;  %v1026_v41 = vadd.f32 1.0, %v1383_v39  ;;  %1388 = vtanh.f32 %v1033_v38 }
 0x3db   :  { %v1030_v43 = vadd.f32 1.0, %v1385_v40 }
 0x3dc   :  { %v1027_v44 = vmul.f32 0.5, %v1026_v41 }
 0x3dd   :  { %v1031_v45 = vmul.f32 0.5, %v1030_v43 }
 0x3de   :  { %v1387_v46 = vpop.eup %1386 }
 0x3df   :  { %v1037_v47 = vmul.f32 %v1031_v45, %v2831_v0  ;;  %v1038_v48 = vmul.f32 %v1387_v46, %v1027_v44 }
 0x3e0   :  { %v1389_v12 = vpop.eup %1388 }
 0x3e1   :  { %v1039_v14 = vadd.f32 %v1038_v48, %v1037_v47  ;;  %v1035_v49 = vadd.f32 1.0, %v1389_v12 }
 0x3e3   :  { %1390 = vtanh.f32 %v1039_v14  ;;  %v1036_v50 = vmul.f32 0.5, %v1035_v49 }
 0x3e9   :  { %v1391_v4 = vpop.eup %1390 }
 0x3ea   :  { %v1041_v58 = vmul.f32 %v1391_v4, %v1036_v50 }
 0x3ec   :  { %1071 = vmatmul.f32.vlgmr.msrb.gmra.mxu0 %v1041_v58  ;;  %1091 = vmatmul.f32.vlgmr.msrb.gmra.mxu1 %v1041_v58 }
 0x3ed   :  { %1111 = vmatmul.f32.vlgmr.msrb.gmra.mxu2 %v1041_v58  ;;  %1131 = vmatmul.f32.vlgmr.msrb.gmra.mxu3 %v1041_v58 }
 0x469   :  { %v1072_v54 = vpop.f32.mrf.mxu0  ;;  %v1092_v56 = vpop.f32.mrf.mxu1 }
 0x46a   :  { %v1135_v55 = vadd.f32 %v1072_v54, %v3193_v53  ;;  %v1136_v1 = vadd.f32 %v1092_v56, %v3194_v11 }
 0x46c   :  { %v1139_v63 = vmul.f32 0.5, %v1135_v55  ;;  %v1143_v57 = vmul.f32 0.5, %v1136_v1 }
 0x46e   :  { %1392 = vtanh.f32 %v1139_v63 }
 0x46f   :  { %1394 = vtanh.f32 %v1143_v57 }
 0x470   :  { %v1112_v3 = vpop.f32.mrf.mxu2  ;;  %v1132_v0 = vpop.f32.mrf.mxu3 }
 0x471   :  { %v1137_v51 = vadd.f32 %v1112_v3, %v3195_v52  ;;  %v1138_v59 = vadd.f32 %v1132_v0, %v3196_v16 }
 0x473   :  { %1396 = vtanh.f32 %v1137_v51  ;;  %v1148_v8 = vmul.f32 0.5, %v1138_v59 }
 0x474   :  { %v1393_v62 = vpop.eup %1392 }
 0x475   :  { %v1395_v10 = vpop.eup %1394  ;;  %v1141_v9 = vadd.f32 1.0, %v1393_v62  ;;  %1398 = vtanh.f32 %v1148_v8 }
 0x476   :  { %v1145_v15 = vadd.f32 1.0, %v1395_v10 }
 0x477   :  { %v1142_v61 = vmul.f32 0.5, %v1141_v9 }
 0x478   :  { %v1146_v60 = vmul.f32 0.5, %v1145_v15 }
 0x479   :  { %v1397_v6 = vpop.eup %1396 }
 0x47a   :  { %v1152_v29 = vmul.f32 %v1146_v60, %v1039_v14  ;;  %v1153_v7 = vmul.f32 %v1397_v6, %v1142_v61 }
 0x47b   :  { %v1399_v2 = vpop.eup %1398 }
 0x47c   :  { %v1154_v42 = vadd.f32 %v1153_v7, %v1152_v29  ;;  %v1150_v13 = vadd.f32 1.0, %v1399_v2 }
 0x47e   :  { %1400 = vtanh.f32 %v1154_v42  ;;  %v1151_v5 = vmul.f32 0.5, %v1150_v13 }
 0x484   :  { %v1401_v17 = vpop.eup %1400 }
 0x485   :  { %v1156_v18 = vmul.f32 %v1401_v17, %v1151_v5 }
 0x487   :  { %1186 = vmatmul.f32.vlgmr.msra.gmra.mxu0 %v1156_v18  ;;  %1206 = vmatmul.f32.vlgmr.msra.gmra.mxu1 %v1156_v18 }
 0x488   :  { %1226 = vmatmul.f32.vlgmr.msra.gmra.mxu2 %v1156_v18  ;;  %1246 = vmatmul.f32.vlgmr.msra.gmra.mxu3 %v1156_v18 }
 0x504   :  { %v1187_v19 = vpop.f32.mrf.mxu0  ;;  %v1207_v20 = vpop.f32.mrf.mxu1 }
 0x505   :  { %v1250_v22 = vadd.f32 %v1187_v19, %v3197_v21  ;;  %v1251_v24 = vadd.f32 %v1207_v20, %v3198_v23 }
 0x507   :  { %v1254_v25 = vmul.f32 0.5, %v1250_v22  ;;  %v1258_v26 = vmul.f32 0.5, %v1251_v24 }
 0x509   :  { %1402 = vtanh.f32 %v1254_v25 }
 0x50a   :  { %1404 = vtanh.f32 %v1258_v26 }
 0x50b   :  { %v1227_v27 = vpop.f32.mrf.mxu2  ;;  %v1247_v28 = vpop.f32.mrf.mxu3 }
 0x50c   :  { %v1252_v31 = vadd.f32 %v1227_v27, %v3199_v30  ;;  %v1253_v33 = vadd.f32 %v1247_v28, %v3200_v32 }
 0x50e   :  { %1406 = vtanh.f32 %v1252_v31  ;;  %v1263_v34 = vmul.f32 0.5, %v1253_v33 }
 0x50f   :  { %v1403_v35 = vpop.eup %1402 }
 0x510   :  { %v1405_v36 = vpop.eup %1404  ;;  %v1256_v37 = vadd.f32 1.0, %v1403_v35  ;;  %1408 = vtanh.f32 %v1263_v34 }
 0x511   :  { %v1260_v38 = vadd.f32 1.0, %v1405_v36 }
 0x512   :  { %v1257_v39 = vmul.f32 0.5, %v1256_v37 }
 0x513   :  { %v1261_v40 = vmul.f32 0.5, %v1260_v38 }
 0x514   :  { %v1407_v41 = vpop.eup %1406 }
 0x515   :  { %v1267_v43 = vmul.f32 %v1261_v40, %v1154_v42  ;;  %v1268_v44 = vmul.f32 %v1407_v41, %v1257_v39 }
 0x516   :  { %v1409_v45 = vpop.eup %1408 }
 0x517   :  { %v1269_v46 = vadd.f32 %v1268_v44, %v1267_v43  ;;  %v1265_v47 = vadd.f32 1.0, %v1409_v45 }
 0x519   :  { %1410 = vtanh.f32 %v1269_v46  ;;  %1284 = vst [vmem:[%s2923_s7] sm:$0xff] %v1269_v46  ;;  %v1266_v48 = vmul.f32 0.5, %v1265_v47 }
 0x51f   :  { %v1411_v12 = vpop.eup %1410 }
 0x520   :  { %v1271_v14 = vmul.f32 %v1411_v12, %v1266_v48 }
 0x522   :  { %1283 = vst [vmem:[%s2924_s6] sm:$0xff] %v1271_v14 }

</bundles_post_ra>
